<compile_context>
chip_gen: v6e
topology: v6e:2x2x1
jax: 0.10.0
libtpu: 0.0.40
codegen_flags: <defaults>
</compile_context>

<pallas_src>
import math
import functools

import jax
import jax.numpy as jnp
from jax import lax
from jax.experimental import pallas as pl
from jax.experimental.pallas import tpu as pltpu


def fixed_embedding_table(c_in: int, d_model: int) -> jnp.ndarray:
    """Deterministic sinusoidal table, identical to FixedEmbedding.__init__."""
    position = jnp.arange(c_in, dtype=jnp.float32)[:, None]              # (c_in, 1)
    div_term = jnp.exp(
        jnp.arange(0, d_model, 2, dtype=jnp.float32)
        * -(math.log(10000.0) / d_model)
    )                                                                    # (d_model//2,)
    w = jnp.zeros((c_in, d_model), dtype=jnp.float32)
    w = w.at[:, 0::2].set(jnp.sin(position * div_term))
    w = w.at[:, 1::2].set(jnp.cos(position * div_term))
    return w


def _temporal_embedding_kernel(x_ref, tbl_ref, o_ref, *, feats, tm, k_pad):
    """x_ref: (TM, 4) raw time features, tbl_ref: (K_pad, d_model) fused table.

    feats: static tuple of (column, vocab_size, row_offset_in_fused_table).
    """
    xb = x_ref[...] + 0.5                                                # x = x + 0.5
    # One iota, reused for every feature's compare.
    iota = lax.broadcasted_iota(jnp.int32, (tm, k_pad), 1)               # (TM, K_pad)
    oh = None
    for col, size, off in feats:
        # ((x + 0.5) * size).long() -> truncation toward zero (values >= 0 here),
        # clamped so an exact 0.5 / roundoff cannot drop the embedding.
        idx = (xb[:, col:col + 1] * jnp.float32(size)).astype(jnp.int32)  # (TM, 1)
        idx = jnp.clip(idx, 0, size - 1) + off
        cmp = iota == idx
        oh = cmp if oh is None else (oh | cmp)
    onehot = oh.astype(tbl_ref.dtype)                                     # (TM, K_pad)
    # Single fused gather+sum as one MXU matmul (one hot bit per feature per row).
    o_ref[...] = jnp.dot(onehot, tbl_ref[...],
                         preferred_element_type=jnp.float32).astype(o_ref.dtype)


def temporal_embedding(x, tables, *, tm=2048, table_dtype=jnp.float32):
    """x: (B, L, F) float32 with F >= 4.  tables: 4-tuple, entries may be None.

    Returns (B, L, d_model) float32 (sum of the active embeddings).
    """
    active = [(col, t) for col, t in enumerate(tables) if t is not None]
    if not active:
        # PyTorch module returns the scalar 0 in this case.
        return jnp.zeros((), dtype=jnp.float32)

    d_model = active[0][1].shape[1]
    B, L, _ = x.shape
    N = B * L

    x_rows = x[..., :4].reshape(N, 4).astype(jnp.float32)

    # Static per-feature metadata: (column, size, offset into fused table).
    feats = []
    off = 0
    for col, t in active:
        size = int(t.shape[0])
        feats.append((col, size, off))
        off += size
    feats = tuple(feats)
    k_total = off
    k_pad = max(128, pl.cdiv(k_total, 128) * 128)

    fused_tbl = jnp.concatenate([t.astype(table_dtype) for _, t in active], axis=0)
    fused_tbl = jnp.pad(fused_tbl, ((0, k_pad - k_total), (0, 0)))

    # Row tile: big enough to amortize grid-step overhead, shrunk (multiple of 8)
    # for tiny inputs so we don't pad a 128-row problem to 2048 rows.
    tm_eff = int(min(tm, ((N + 7) // 8) * 8))
    n_pad = pl.cdiv(N, tm_eff) * tm_eff
    if n_pad != N:
        # Padded rows produce valid (in-range) indices and are sliced off below.
        x_rows = jnp.pad(x_rows, ((0, n_pad - N), (0, 0)))

    kernel = functools.partial(_temporal_embedding_kernel,
                               feats=feats, tm=tm_eff, k_pad=k_pad)

    out = pl.pallas_call(
        kernel,
        out_shape=jax.ShapeDtypeStruct((n_pad, d_model), jnp.float32),
        grid_spec=pltpu.PrefetchScalarGridSpec(
            num_scalar_prefetch=0,
            grid=(n_pad // tm_eff,),
            in_specs=[
                pl.BlockSpec((tm_eff, 4), lambda i: (i, 0)),
                pl.BlockSpec((k_pad, d_model), lambda i: (0, 0)),  # table stays resident
            ],
            out_specs=pl.BlockSpec((tm_eff, d_model), lambda i: (i, 0)),
        ),
        compiler_params=pltpu.CompilerParams(
            dimension_semantics=("parallel",),   # shards row tiles across TCs (v7x)
        ),
    )(x_rows, fused_tbl)

    return out[:N].reshape(B, L, d_model)


def temporal_embedding_ref(x, tables):
    """Pure-JAX reference mirroring the PyTorch forward (in-range inputs)."""
    xb = x + 0.5
    out = 0.0
    for col, w in enumerate(tables):
        if w is None:
            continue
        s = w.shape[0]
        idx = jnp.clip((xb[:, :, col] * s).astype(jnp.int32), 0, s - 1)
        out = out + jnp.take(w, idx, axis=0)
    return out


if __name__ == "__main__":
    # Small, Corrformer-like config.
    d_model = 32
    time_of_day_size = 24
    day_of_week_size = 7
    day_of_month_size = 32
    day_of_year_size = 366

    B, L, F = 2, 64, 5  # B*L = 128 rows

    tables = (
        fixed_embedding_table(time_of_day_size, d_model),
        fixed_embedding_table(day_of_week_size, d_model),
        fixed_embedding_table(day_of_month_size, d_model),
        fixed_embedding_table(day_of_year_size, d_model),
    )

    # Time features are normalized to [-0.5, 0.5) in Corrformer, so that
    # (x + 0.5) * size yields valid embedding indices.
    key = jax.random.PRNGKey(0)
    x = jax.random.uniform(key, (B, L, F), dtype=jnp.float32,
                           minval=-0.5, maxval=0.5)

    y = temporal_embedding(x, tables)
    y = jax.block_until_ready(y)

    y_ref = temporal_embedding_ref(x, tables)
    assert y.shape == (B, L, d_model)
    assert jnp.allclose(y, y_ref, atol=1e-5), "mismatch vs reference"

    print("KERNEL_OK")
</pallas_src>

<mosaic_0001>
module attributes {stable_mosaic.version = 11 : i64} {
  func.func @_temporal_embedding_kernel(%arg0: i32, %arg1: memref<128x4xf32, #tpu.memory_space<vmem>>, %arg2: memref<512x32xf32, #tpu.memory_space<vmem>>, %arg3: memref<128x32xf32, #tpu.memory_space<vmem>>) attributes {dimension_semantics = [#tpu.dimension_semantics<parallel>], iteration_bounds = array<i64: 1>, scalar_prefetch = 0 : i64, scratch_operands = 0 : i64, tpu.core_type = #tpu.core_type<tc>, window_params = [{transform_indices = @transform_0, window_bounds = array<i64: 128, 4>}, {pipeline_mode = #tpu.pipeline_mode<synchronous>, transform_indices = @transform_1, window_bounds = array<i64: 512, 32>}, {transform_indices = @transform_2, window_bounds = array<i64: 128, 32>}]} {
    %c0 = arith.constant 0 : index
    %c0_0 = arith.constant 0 : index
    %0 = vector.load %arg1[%c0, %c0_0] : memref<128x4xf32, #tpu.memory_space<vmem>>, vector<128x4xf32>
    %cst = arith.constant 5.000000e-01 : f32
    %1 = vector.broadcast %cst : f32 to vector<128x4xf32>
    %2 = arith.addf %0, %1 : vector<128x4xf32>
    %3 = tpu.iota {dimensions = array<i32: 1>} : vector<128x512xi32>
    %4 = vector.extract_strided_slice %2 {offsets = [0, 0], sizes = [128, 1], strides = [1, 1]} : vector<128x4xf32> to vector<128x1xf32>
    %cst_1 = arith.constant 2.400000e+01 : f32
    %5 = vector.broadcast %cst_1 : f32 to vector<128x1xf32>
    %6 = arith.mulf %4, %5 : vector<128x1xf32>
    %7 = arith.fptosi %6 : vector<128x1xf32> to vector<128x1xi32>
    %c0_i32 = arith.constant 0 : i32
    %c23_i32 = arith.constant 23 : i32
    %8 = vector.broadcast %c0_i32 : i32 to vector<128x1xi32>
    %9 = arith.maxsi %8, %7 : vector<128x1xi32>
    %10 = vector.broadcast %c23_i32 : i32 to vector<128x1xi32>
    %11 = arith.minsi %10, %9 : vector<128x1xi32>
    %c0_i32_2 = arith.constant 0 : i32
    %12 = vector.broadcast %c0_i32_2 : i32 to vector<128x1xi32>
    %13 = arith.addi %11, %12 : vector<128x1xi32>
    %14 = vector.broadcast %13 : vector<128x1xi32> to vector<128x512xi32>
    %15 = arith.cmpi eq, %3, %14 : vector<128x512xi32>
    %16 = vector.extract_strided_slice %2 {offsets = [0, 1], sizes = [128, 1], strides = [1, 1]} : vector<128x4xf32> to vector<128x1xf32>
    %cst_3 = arith.constant 7.000000e+00 : f32
    %17 = vector.broadcast %cst_3 : f32 to vector<128x1xf32>
    %18 = arith.mulf %16, %17 : vector<128x1xf32>
    %19 = arith.fptosi %18 : vector<128x1xf32> to vector<128x1xi32>
    %c0_i32_4 = arith.constant 0 : i32
    %c6_i32 = arith.constant 6 : i32
    %20 = vector.broadcast %c0_i32_4 : i32 to vector<128x1xi32>
    %21 = arith.maxsi %20, %19 : vector<128x1xi32>
    %22 = vector.broadcast %c6_i32 : i32 to vector<128x1xi32>
    %23 = arith.minsi %22, %21 : vector<128x1xi32>
    %c24_i32 = arith.constant 24 : i32
    %24 = vector.broadcast %c24_i32 : i32 to vector<128x1xi32>
    %25 = arith.addi %23, %24 : vector<128x1xi32>
    %26 = vector.broadcast %25 : vector<128x1xi32> to vector<128x512xi32>
    %27 = arith.cmpi eq, %3, %26 : vector<128x512xi32>
    %28 = arith.ori %15, %27 : vector<128x512xi1>
    %29 = vector.extract_strided_slice %2 {offsets = [0, 2], sizes = [128, 1], strides = [1, 1]} : vector<128x4xf32> to vector<128x1xf32>
    %cst_5 = arith.constant 3.200000e+01 : f32
    %30 = vector.broadcast %cst_5 : f32 to vector<128x1xf32>
    %31 = arith.mulf %29, %30 : vector<128x1xf32>
    %32 = arith.fptosi %31 : vector<128x1xf32> to vector<128x1xi32>
    %c0_i32_6 = arith.constant 0 : i32
    %c31_i32 = arith.constant 31 : i32
    %33 = vector.broadcast %c0_i32_6 : i32 to vector<128x1xi32>
    %34 = arith.maxsi %33, %32 : vector<128x1xi32>
    %35 = vector.broadcast %c31_i32 : i32 to vector<128x1xi32>
    %36 = arith.minsi %35, %34 : vector<128x1xi32>
    %c31_i32_7 = arith.constant 31 : i32
    %37 = vector.broadcast %c31_i32_7 : i32 to vector<128x1xi32>
    %38 = arith.addi %36, %37 : vector<128x1xi32>
    %39 = vector.broadcast %38 : vector<128x1xi32> to vector<128x512xi32>
    %40 = arith.cmpi eq, %3, %39 : vector<128x512xi32>
    %41 = arith.ori %28, %40 : vector<128x512xi1>
    %42 = vector.extract_strided_slice %2 {offsets = [0, 3], sizes = [128, 1], strides = [1, 1]} : vector<128x4xf32> to vector<128x1xf32>
    %cst_8 = arith.constant 3.660000e+02 : f32
    %43 = vector.broadcast %cst_8 : f32 to vector<128x1xf32>
    %44 = arith.mulf %42, %43 : vector<128x1xf32>
    %45 = arith.fptosi %44 : vector<128x1xf32> to vector<128x1xi32>
    %c0_i32_9 = arith.constant 0 : i32
    %c365_i32 = arith.constant 365 : i32
    %46 = vector.broadcast %c0_i32_9 : i32 to vector<128x1xi32>
    %47 = arith.maxsi %46, %45 : vector<128x1xi32>
    %48 = vector.broadcast %c365_i32 : i32 to vector<128x1xi32>
    %49 = arith.minsi %48, %47 : vector<128x1xi32>
    %c63_i32 = arith.constant 63 : i32
    %50 = vector.broadcast %c63_i32 : i32 to vector<128x1xi32>
    %51 = arith.addi %49, %50 : vector<128x1xi32>
    %52 = vector.broadcast %51 : vector<128x1xi32> to vector<128x512xi32>
    %53 = arith.cmpi eq, %3, %52 : vector<128x512xi32>
    %54 = arith.ori %41, %53 : vector<128x512xi1>
    %55 = arith.extui %54 : vector<128x512xi1> to vector<128x512xi32>
    %56 = arith.sitofp %55 : vector<128x512xi32> to vector<128x512xf32>
    %c0_10 = arith.constant 0 : index
    %c0_11 = arith.constant 0 : index
    %57 = vector.load %arg2[%c0_10, %c0_11] : memref<512x32xf32, #tpu.memory_space<vmem>>, vector<512x32xf32>
    %cst_12 = arith.constant dense<0.000000e+00> : vector<128x32xf32>
    %58 = tpu.matmul %56, %57, %cst_12 {dimension_numbers = #tpu.dot_dimension_numbers<[1], [0], [0], [1], [0, 0, 1, 1], [], []>} : vector<128x512xf32>, vector<512x32xf32>, vector<128x32xf32> -> vector<128x32xf32>
    %c0_13 = arith.constant 0 : index
    %c0_14 = arith.constant 0 : index
    %59 = vector.load %arg3[%c0_13, %c0_14] : memref<128x32xf32, #tpu.memory_space<vmem>>, vector<128x32xf32>
    tpu.vector_store %arg3[%c0_13, %c0_14], %58 {strides = array<i32>} : memref<128x32xf32, #tpu.memory_space<vmem>>, vector<128x32xf32>,
    return
  }
  func.func @transform_0(%arg0: i32) -> (i32, i32) {
    %c0_i32 = arith.constant 0 : i32
    %c0_i32_0 = arith.constant 0 : i32
    return %arg0, %c0_i32 : i32, i32
  }
  func.func @transform_1(%arg0: i32) -> (i32, i32) {
    %c0_i32 = arith.constant 0 : i32
    %c0_i32_0 = arith.constant 0 : i32
    %c0_i32_1 = arith.constant 0 : i32
    return %c0_i32, %c0_i32_0 : i32, i32
  }
  func.func @transform_2(%arg0: i32) -> (i32, i32) {
    %c0_i32 = arith.constant 0 : i32
    %c0_i32_0 = arith.constant 0 : i32
    return %arg0, %c0_i32 : i32, i32
  }
}

</mosaic_0001>

<bundles_post_ra>
// kernel: tpu_custom_call.1
= control target key start
LH: loop header
LB: loop body
LE: loop exit
PB: predicated region body
PF: predicated region fallthrough
CT: control target
= control target key end

     0   :  { %v2094_v0 = vmov 0   ;;  %s3383_s0 = inlined_call_operand.vmem [shape: f32[128,4], index: 0, kind: input, shape index: {}]   ;;  %s3384_s1 = inlined_call_operand.vmem [shape: f32[512,32], index: 1, kind: input, shape index: {}]   ;;  %s3385_s2 = inlined_call_operand.vmem [shape: f32[128,32], index: 2, kind: output, shape index: {}]  }
   0x1   :  { %2045 = vset.pattern.permute.xlu1 %v2094_v0  ;;  %2044 = vset.pattern.permute.xlu0 %v2094_v0  ;;  %v12_v1 = vld [vmem:[%s3383_s0 + $0x8] sm:$0xff]  ;;  %v11_v2 = vld [vmem:[%s3383_s0] sm:$0xff]  ;;  %v13_v3 = vld [vmem:[%s3383_s0 + $0x10] sm:$0xff] }
   0x2   :  { %v2125_v4 = vadd.f32 0.5, %v12_v1  ;;  %v2127_v5 = vadd.f32 0.5, %v11_v2  ;;  %v2129_v6 = vadd.f32 0.5, %v13_v3  ;;  %v15_v7 = vld [vmem:[%s3383_s0 + $0x20] sm:$0xff]  ;;  %v18_v8 = vld [vmem:[%s3383_s0 + $0x38] sm:$0xff]  ;;  %v16_v9 = vld [vmem:[%s3383_s0 + $0x28] sm:$0xff] }
   0x3   :  { %v2140_v10 = vadd.f32 0.5, %v15_v7  ;;  %v2142_v11 = vadd.f32 0.5, %v18_v8  ;;  %v2144_v12 = vadd.f32 0.5, %v16_v9  ;;  %v19_v53 = vld [vmem:[%s3383_s0 + $0x40] sm:$0xff]  ;;  %v14_v58 = vld [vmem:[%s3383_s0 + $0x18] sm:$0xff] }
   0x4   :  { %v49_v13 = vmul.f32 24.0, %v2125_v4  ;;  %v48_v14 = vmul.f32 24.0, %v2127_v5  ;;  %v50_v15 = vmul.f32 24.0, %v2129_v6  ;;  %v544_v16 = vmul.f32 32.0, %v2127_v5 }
   0x5   :  { %v52_v17 = vmul.f32 24.0, %v2140_v10  ;;  %v833_v18 = vmul.f32 366.0, %v2125_v4  ;;  %v836_v19 = vmul.f32 366.0, %v2140_v10  ;;  %v832_v20 = vmul.f32 366.0, %v2127_v5 }
   0x6   :  { %v1913_v21 = vtrunc.f32 %v49_v13  ;;  %v1911_v22 = vtrunc.f32 %v48_v14  ;;  %v1915_v23 = vtrunc.f32 %v50_v15  ;;  %v1975_v24 = vtrunc.f32 %v544_v16  ;;  %v1279_v14 = vld [vmem:[%s3384_s1 + $0xf8] sm:$0xff] }
   0x7   :  { %v1919_v25 = vtrunc.f32 %v52_v17  ;;  %v2009_v26 = vtrunc.f32 %v833_v18  ;;  %v2015_v27 = vtrunc.f32 %v836_v19  ;;  %v2007_v28 = vtrunc.f32 %v832_v20  ;;  %v1311_v15 = vld [vmem:[%s3384_s1 + $0x1f8] sm:$0xff]  ;;  %1751 = vmatprep.subr.mxu0 %v1279_v14 }
   0x8   :  { %v1914_v29 = vcvt.f32.s32 %v1913_v21  ;;  %v1912_v30 = vcvt.f32.s32 %v1911_v22  ;;  %v1916_v31 = vcvt.f32.s32 %v1915_v23  ;;  %v1976_v32 = vcvt.f32.s32 %v1975_v24  ;;  %v1263_v21 = vld [vmem:[%s3384_s1 + $0x78] sm:$0xff]  ;;  %1831 = vmatprep.subr.mxu1 %v1311_v15 }
   0x9   :  { %v1920_v33 = vcvt.f32.s32 %v1919_v25  ;;  %v2010_v34 = vcvt.f32.s32 %v2009_v26  ;;  %v2016_v35 = vcvt.f32.s32 %v2015_v27  ;;  %v2008_v36 = vcvt.f32.s32 %v2007_v28  ;;  %v1295_v22 = vld [vmem:[%s3384_s1 + $0x178] sm:$0xff]  ;;  %v1278_v27 = vld [vmem:[%s3384_s1 + $0xf0] sm:$0xff]  ;;  %1752 = vmatpush3.msra.mxu0 %v1263_v21 }
   0xa   :  { %vm82_vm0 = vcmp.gt.s32.totalorder %v1914_v29, 0  ;;  %vm80_vm1 = vcmp.gt.s32.totalorder %v1912_v30, 0  ;;  %vm84_vm2 = vcmp.gt.s32.totalorder %v1916_v31, 0  ;;  %vm576_vm3 = vcmp.gt.s32.totalorder %v1976_v32, 0  ;;  %v1310_v28 = vld [vmem:[%s3384_s1 + $0x1f0] sm:$0xff]  ;;  %1832 = vmatpush3.msra.mxu1 %v1295_v22  ;;  %1753 = vmatprep.subr.mxu0 %v1278_v27  ;;  %v1259_v14 = vld [vmem:[%s3384_s1 + $0x58] sm:$0xff] }
   0xb   :  { %v83_v37 = vsel %vm82_vm0, %v1914_v29, 0  ;;  %v81_v38 = vsel %vm80_vm1, %v1912_v30, 0  ;;  %v85_v39 = vsel %vm84_vm2, %v1916_v31, 0  ;;  %vm88_vm4 = vcmp.gt.s32.totalorder %v1920_v33, 0  ;;  %1833 = vmatprep.subr.mxu1 %v1310_v28 }
   0xc   :  { %vm114_vm5 = vcmp.lt.s32.totalorder %v83_v37, 23  ;;  %vm112_vm6 = vcmp.lt.s32.totalorder %v81_v38, 23  ;;  %vm116_vm7 = vcmp.lt.s32.totalorder %v85_v39, 23  ;;  %v89_v40 = vsel %vm88_vm4, %v1920_v33, 0  ;;  %v1262_v33 = vld [vmem:[%s3384_s1 + $0x70] sm:$0xff] }
   0xd   :  { %v115_v41 = vsel %vm114_vm5, %v83_v37, 23  ;;  %v113_v42 = vsel %vm112_vm6, %v81_v38, 23  ;;  %v117_v43 = vsel %vm116_vm7, %v85_v39, 23  ;;  %vm120_vm8 = vcmp.lt.s32.totalorder %v89_v40, 23  ;;  %v1294_v37 = vld [vmem:[%s3384_s1 + $0x170] sm:$0xff]  ;;  %v1277_v38 = vld [vmem:[%s3384_s1 + $0xe8] sm:$0xff]  ;;  %1754 = vmatpush3.msra.mxu0 %v1262_v33 }
   0xe   :  { %148 = vperm.xlu1 %2045, %v115_v41   ;;  %145 = vperm.xlu0 %2044, %v113_v42   ;;  %v121_v44 = vsel %vm120_vm8, %v89_v40, 23  ;;  %v577_v45 = vsel %vm576_vm3, %v1976_v32, 0  ;;  %vm866_vm9 = vcmp.gt.s32.totalorder %v2010_v34, 0  ;;  %vm872_vm10 = vcmp.gt.s32.totalorder %v2016_v35, 0  ;;  %v1309_v40 = vld [vmem:[%s3384_s1 + $0x1e8] sm:$0xff]  ;;  %v1290_v33 = vld [vmem:[%s3384_s1 + $0x150] sm:$0xff] }
   0xf   :  { %vm608_vm11 = vcmp.lt.s32.totalorder %v577_v45, 31  ;;  %v867_v46 = vsel %vm866_vm9, %v2010_v34, 0  ;;  %v873_v47 = vsel %vm872_vm10, %v2016_v35, 0  ;;  %vm864_vm12 = vcmp.gt.s32.totalorder %v2008_v36, 0  ;;  %v1261_v41 = vld [vmem:[%s3384_s1 + $0x68] sm:$0xff]  ;;  %1834 = vmatpush3.msra.mxu1 %v1294_v37  ;;  %1755 = vmatprep.subr.mxu0 %v1277_v38 }
  0x10   :  { %v609_v48 = vsel %vm608_vm11, %v577_v45, 31  ;;  %vm898_vm13 = vcmp.lt.s32.totalorder %v867_v46, 365  ;;  %vm904_vm14 = vcmp.lt.s32.totalorder %v873_v47, 365  ;;  %v865_v49 = vsel %vm864_vm12, %v2008_v36, 0  ;;  %v1293_v45 = vld [vmem:[%s3384_s1 + $0x168] sm:$0xff]  ;;  %1835 = vmatprep.subr.mxu1 %v1309_v40  ;;  %1756 = vmatpush3.msra.mxu0 %v1261_v41 }
  0x11   :  { %v640_v50 = vadd.s32 31, %v609_v48  ;;  %v899_v51 = vsel %vm898_vm13, %v867_v46, 365  ;;  %v905_v52 = vsel %vm904_vm14, %v873_v47, 365  ;;  %vm896_vm15 = vcmp.lt.s32.totalorder %v865_v49, 365  ;;  %1836 = vmatpush3.msra.mxu1 %v1293_v45  ;;  %v1305_v38 = vld [vmem:[%s3384_s1 + $0x1c8] sm:$0xff] }
  0x12   :  { %151 = vperm.xlu1 %2045, %v117_v43   ;;  %157 = vperm.xlu0 %2044, %v121_v44   ;;  %v929_v54 = vadd.s32 63, %v899_v51  ;;  %v932_v55 = vadd.s32 63, %v905_v52  ;;  %v897_v56 = vsel %vm896_vm15, %v865_v49, 365  ;;  %v839_v57 = vmul.f32 366.0, %v2142_v11  ;;  %v22_v44 = vld [vmem:[%s3383_s0 + $0x58] sm:$0xff]  ;;  %v1276_v49 = vld [vmem:[%s3384_s1 + $0xe0] sm:$0xff] }
  0x13   :  { %v928_v59 = vadd.s32 63, %v897_v56  ;;  %v545_v60 = vmul.f32 32.0, %v2125_v4  ;;  %v546_v61 = vmul.f32 32.0, %v2129_v6  ;;  %v258_v62 = vmul.f32 7.0, %v2129_v6  ;;  %1757 = vmatprep.subr.mxu0 %v1276_v49  ;;  %v1257_v41 = vld [vmem:[%s3384_s1 + $0x48] sm:$0xff] }
  0x14   :  { %v2021_v63 = vtrunc.f32 %v839_v57  ;;  %v549_v1 = vmul.f32 32.0, %v2144_v12  ;;  %v834_v2 = vmul.f32 366.0, %v2129_v6  ;;  %v2167_v3 = vadd.f32 0.5, %v19_v53  ;;  %v1308_v53 = vld [vmem:[%s3384_s1 + $0x1e0] sm:$0xff] }
  0x15   :  { %v1977_v7 = vtrunc.f32 %v545_v60  ;;  %v1979_v8 = vtrunc.f32 %v546_v61  ;;  %v1947_v9 = vtrunc.f32 %v258_v62  ;;  %v2169_v13 = vadd.f32 0.5, %v14_v58  ;;  %v1260_v57 = vld [vmem:[%s3384_s1 + $0x60] sm:$0xff]  ;;  %v1275_v61 = vld [vmem:[%s3384_s1 + $0xd8] sm:$0xff]  ;;  %1837 = vmatprep.subr.mxu1 %v1308_v53 }
  0x16   :  { %v2095_v16 = vmov 2   ;;  %v2096_v17 = vmov 3   ;;  %v2022_v6 = vcvt.f32.s32 %v2021_v63  ;;  %v1985_v18 = vtrunc.f32 %v549_v1  ;;  %v1292_v58 = vld [vmem:[%s3384_s1 + $0x160] sm:$0xff]  ;;  %1758 = vmatpush3.msra.mxu0 %v1260_v57 }
  0x17   :  { %2046 = vset.pattern.permute.xlu1 %v2095_v16  ;;  %2054 = vset.pattern.permute.xlu0 %v2096_v17  ;;  %v2011_v19 = vtrunc.f32 %v834_v2  ;;  %v552_v20 = vmul.f32 32.0, %v2167_v3  ;;  %v1978_v23 = vcvt.f32.s32 %v1977_v7  ;;  %v1980_v24 = vcvt.f32.s32 %v1979_v8  ;;  %v1307_v7 = vld [vmem:[%s3384_s1 + $0x1d8] sm:$0xff] }
  0x18   :  { %657 = vperm.xlu1 %2046, %v640_v50   ;;  %948 = vperm.xlu0 %2054, %v929_v54   ;;  %v1948_v25 = vcvt.f32.s32 %v1947_v9  ;;  %v2187_v26 = vmul.f32 24.0, %v2169_v13  ;;  %vm878_vm0 = vcmp.gt.s32.totalorder %v2022_v6, 0  ;;  %v1986_v29 = vcvt.f32.s32 %v1985_v18 }
  0x19   :  { %v2012_v30 = vcvt.f32.s32 %v2011_v19  ;;  %v1991_v31 = vtrunc.f32 %v552_v20  ;;  %v879_v32 = vsel %vm878_vm0, %v2022_v6, 0  ;;  %vm578_vm1 = vcmp.gt.s32.totalorder %v1978_v23, 0  ;;  %1838 = vmatpush3.msra.mxu1 %v1292_v58  ;;  %1759 = vmatprep.subr.mxu0 %v1275_v61  ;;  %v1291_v19 = vld [vmem:[%s3384_s1 + $0x158] sm:$0xff] }
  0x1a   :  { %vm580_vm2 = vcmp.gt.s32.totalorder %v1980_v24, 0  ;;  %vm292_vm3 = vcmp.gt.s32.totalorder %v1948_v25, 0  ;;  %vm910_vm4 = vcmp.lt.s32.totalorder %v879_v32, 365  ;;  %v579_v34 = vsel %vm578_vm1, %v1978_v23, 0  ;;  %1839 = vmatprep.subr.mxu1 %v1307_v7  ;;  %1760 = vmatpush3.msra.mxu0 %v1259_v14 }
  0x1b   :  { %v581_v35 = vsel %vm580_vm2, %v1980_v24, 0  ;;  %v293_v36 = vsel %vm292_vm3, %v1948_v25, 0  ;;  %v911_v39 = vsel %vm910_vm4, %v879_v32, 365  ;;  %vm610_vm5 = vcmp.lt.s32.totalorder %v579_v34, 31  ;;  %v1274_v24 = vld [vmem:[%s3384_s1 + $0xd0] sm:$0xff]  ;;  %1840 = vmatpush3.msra.mxu1 %v1291_v19 }
  0x1c   :  { %2047 = vset.pattern.permute.xlu1 %v2096_v17  ;;  %957 = vperm.xlu0 %2054, %v932_v55   ;;  %vm612_vm6 = vcmp.lt.s32.totalorder %v581_v35, 31  ;;  %vm324_vm7 = vcmp.lt.s32.totalorder %v293_v36, 6  ;;  %v935_v42 = vadd.s32 63, %v911_v39  ;;  %v611_v43 = vsel %vm610_vm5, %v579_v34, 31  ;;  %v1273_v34 = vld [vmem:[%s3384_s1 + $0xc8] sm:$0xff] }
  0x1d   :  { %945 = vperm.xlu1 %2047, %v928_v59   ;;  %v641_v46 = vadd.s32 31, %v611_v43  ;;  %v613_v47 = vsel %vm612_vm6, %v581_v35, 31  ;;  %v325_v48 = vsel %vm324_vm7, %v293_v36, 6  ;;  %vm586_vm8 = vcmp.gt.s32.totalorder %v1986_v29, 0  ;;  %1761 = vmatprep.subr.mxu0 %v1274_v24 }
  0x1e   :  { %v587_v50 = vsel %vm586_vm8, %v1986_v29, 0  ;;  %vm868_vm9 = vcmp.gt.s32.totalorder %v2012_v30, 0  ;;  %v1992_v51 = vcvt.f32.s32 %v1991_v31  ;;  %v1917_v52 = vtrunc.f32 %v2187_v26 }
  0x1f   :  { %vm618_vm10 = vcmp.lt.s32.totalorder %v587_v50, 31  ;;  %v869_v54 = vsel %vm868_vm9, %v2012_v30, 0  ;;  %v2224_v55 = vadd.f32 0.5, %v22_v44  ;;  %v547_v56 = vmul.f32 32.0, %v2169_v13  ;;  %v1289_v44 = vld [vmem:[%s3384_s1 + $0x148] sm:$0xff] }
  0x20   :  { %966 = vperm.xlu0 %2054, %v935_v42   ;;  %v642_v59 = vadd.s32 31, %v613_v47  ;;  %vm900_vm11 = vcmp.lt.s32.totalorder %v869_v54, 365  ;;  %vm592_vm12 = vcmp.gt.s32.totalorder %v1992_v51, 0  ;;  %v1918_v60 = vcvt.f32.s32 %v1917_v52  ;;  %v1272_v47 = vld [vmem:[%s3384_s1 + $0xc0] sm:$0xff] }
  0x21   :  { %2048 = vset.pattern.permute.xlu1 %v2095_v16  ;;  %v619_v62 = vsel %vm618_vm10, %v587_v50, 31  ;;  %v901_v63 = vsel %vm900_vm11, %v869_v54, 365  ;;  %v593_v1 = vsel %vm592_vm12, %v1992_v51, 0  ;;  %v555_v2 = vmul.f32 32.0, %v2224_v55  ;;  %v1256_v50 = vld [vmem:[%s3384_s1 + $0x40] sm:$0xff]  ;;  %v1271_v54 = vld [vmem:[%s3384_s1 + $0xb8] sm:$0xff] }
  0x22   :  { %660 = vperm.xlu1 %2048, %v641_v46   ;;  %v354_v8 = vadd.s32 24, %v325_v48  ;;  %vm624_vm13 = vcmp.lt.s32.totalorder %v593_v1, 31  ;;  %vm86_vm14 = vcmp.gt.s32.totalorder %v1918_v60, 0  ;;  %v1981_v9 = vtrunc.f32 %v547_v56  ;;  %v1304_v48 = vld [vmem:[%s3384_s1 + $0x1c0] sm:$0xff] }
  0x23   :  { %v625_v15 = vsel %vm624_vm13, %v593_v1, 31  ;;  %v1997_v6 = vtrunc.f32 %v555_v2  ;;  %v256_v18 = vmul.f32 7.0, %v2127_v5  ;;  %v645_v20 = vadd.s32 31, %v619_v62  ;;  %v1306_v5 = vld [vmem:[%s3384_s1 + $0x1d0] sm:$0xff]  ;;  %v1288_v51 = vld [vmem:[%s3384_s1 + $0x140] sm:$0xff]  ;;  %v1255_v1 = vld [vmem:[%s3384_s1 + $0x38] sm:$0xff] }
  0x24   :  { %2065 = vset.pattern.permute.xlu0 %v2095_v16  ;;  %v930_v21 = vadd.s32 63, %v901_v63  ;;  %v1982_v22 = vcvt.f32.s32 %v1981_v9  ;;  %v257_v23 = vmul.f32 7.0, %v2125_v4  ;;  %v2097_v25 = vmov 1   ;;  %v1258_v4 = vld [vmem:[%s3384_s1 + $0x50] sm:$0xff]  ;;  %1841 = vmatprep.subr.mxu1 %v1306_v5  ;;  %v1303_v63 = vld [vmem:[%s3384_s1 + $0x1b8] sm:$0xff] }
  0x25   :  { %663 = vperm.xlu0 %2065, %v642_v59   ;;  %v87_v26 = vsel %vm86_vm14, %v1918_v60, 0  ;;  %v1998_v27 = vcvt.f32.s32 %v1997_v6  ;;  %v1943_v28 = vtrunc.f32 %v256_v18  ;;  %v835_v29 = vmul.f32 366.0, %v2169_v13  ;;  %1762 = vmatpush3.msra.mxu0 %v1258_v4  ;;  %v17_v60 = vld [vmem:[%s3383_s0 + $0x30] sm:$0xff]  ;;  %v1253_v4 = vld [vmem:[%s3384_s1 + $0x28] sm:$0xff] }
  0x26   :  { %2049 = vset.pattern.permute.xlu1 %v2097_v25  ;;  %v648_v30 = vadd.s32 31, %v625_v15  ;;  %vm582_vm15 = vcmp.gt.s32.totalorder %v1982_v22, 0  ;;  %v1945_v31 = vtrunc.f32 %v257_v23  ;;  %v259_v32 = vmul.f32 7.0, %v2169_v13  ;;  %1842 = vmatpush3.msra.mxu1 %v1290_v33  ;;  %v1302_v6 = vld [vmem:[%s3384_s1 + $0x1b0] sm:$0xff]  ;;  %v1285_v33 = vld [vmem:[%s3384_s1 + $0x128] sm:$0xff] }
  0x27   :  { %375 = vperm.xlu1 %2049, %v354_v8   ;;  %vm598_vm0 = vcmp.gt.s32.totalorder %v1998_v27, 0  ;;  %v583_v35 = vsel %vm582_vm15, %v1982_v22, 0  ;;  %v1944_v36 = vcvt.f32.s32 %v1943_v28  ;;  %v2013_v37 = vtrunc.f32 %v835_v29  ;;  %1763 = vmatprep.subr.mxu0 %v1273_v34  ;;  %v1270_v8 = vld [vmem:[%s3384_s1 + $0xb0] sm:$0xff]  ;;  %v1269_v28 = vld [vmem:[%s3384_s1 + $0xa8] sm:$0xff]  ;;  %v1268_v34 = vld [vmem:[%s3384_s1 + $0xa0] sm:$0xff] }
  0x28   :  { %vm118_vm1 = vcmp.lt.s32.totalorder %v87_v26, 23  ;;  %v599_v13 = vsel %vm598_vm0, %v1998_v27, 0  ;;  %v1946_v39 = vcvt.f32.s32 %v1945_v31  ;;  %v1949_v40 = vtrunc.f32 %v259_v32  ;;  %1843 = vmatprep.subr.mxu1 %v1305_v38  ;;  %1764 = vmatpush3.msra.mxu0 %v1257_v41  ;;  %v1254_v18 = vld [vmem:[%s3384_s1 + $0x30] sm:$0xff]  ;;  %v1301_v29 = vld [vmem:[%s3384_s1 + $0x1a8] sm:$0xff]  ;;  %v1252_v41 = vld [vmem:[%s3384_s1 + $0x20] sm:$0xff] }
  0x29   :  { %672 = vperm.xlu0 %2065, %v645_v20   ;;  %vm630_vm2 = vcmp.lt.s32.totalorder %v599_v13, 31  ;;  %vm288_vm3 = vcmp.gt.s32.totalorder %v1944_v36, 0  ;;  %v2014_v42 = vcvt.f32.s32 %v2013_v37  ;;  %v260_v43 = vmul.f32 7.0, %v2140_v10  ;;  %1844 = vmatpush3.msra.mxu1 %v1289_v44  ;;  %v1286_v27 = vld [vmem:[%s3384_s1 + $0x130] sm:$0xff] }
  0x2a   :  { %v631_v45 = vsel %vm630_vm2, %v599_v13, 31  ;;  %vm614_vm4 = vcmp.lt.s32.totalorder %v583_v35, 31  ;;  %v289_v46 = vsel %vm288_vm3, %v1944_v36, 0  ;;  %vm290_vm5 = vcmp.gt.s32.totalorder %v1946_v39, 0  ;;  %1765 = vmatprep.subr.mxu0 %v1272_v47  ;;  %1845 = vmatprep.subr.mxu1 %v1304_v48  ;;  %v1267_v47 = vld [vmem:[%s3384_s1 + $0x98] sm:$0xff] }
  0x2b   :  { %2050 = vset.pattern.permute.xlu1 %v2096_v17  ;;  %vm320_vm6 = vcmp.lt.s32.totalorder %v289_v46, 6  ;;  %v291_v49 = vsel %vm290_vm5, %v1946_v39, 0  ;;  %vm870_vm7 = vcmp.gt.s32.totalorder %v2014_v42, 0  ;;  %v651_v52 = vadd.s32 31, %v631_v45  ;;  %1766 = vmatpush3.msra.mxu0 %v1256_v50  ;;  %v1300_v39 = vld [vmem:[%s3384_s1 + $0x1a0] sm:$0xff]  ;;  %v1299_v48 = vld [vmem:[%s3384_s1 + $0x198] sm:$0xff] }
  0x2c   :  { %951 = vperm.xlu1 %2050, %v930_v21   ;;  %v1950_v53 = vcvt.f32.s32 %v1949_v40  ;;  %v119_v56 = vsel %vm118_vm1, %v87_v26, 23  ;;  %v615_v57 = vsel %vm614_vm4, %v583_v35, 31  ;;  %v871_v58 = vsel %vm870_vm7, %v2014_v42, 0  ;;  %1846 = vmatpush3.msra.mxu1 %v1288_v51  ;;  %v1284_v42 = vld [vmem:[%s3384_s1 + $0x120] sm:$0xff]  ;;  %v1251_v51 = vld [vmem:[%s3384_s1 + $0x18] sm:$0xff] }
  0x2d   :  { %681 = vperm.xlu0 %2065, %v648_v30   ;;  %v1951_v59 = vtrunc.f32 %v260_v43  ;;  %v321_v61 = vsel %vm320_vm6, %v289_v46, 6  ;;  %vm322_vm8 = vcmp.lt.s32.totalorder %v291_v49, 6  ;;  %v548_v62 = vmul.f32 32.0, %v2140_v10  ;;  %1767 = vmatprep.subr.mxu0 %v1271_v54  ;;  %v1287_v10 = vld [vmem:[%s3384_s1 + $0x138] sm:$0xff]  ;;  %v23_v46 = vld [vmem:[%s3383_s0 + $0x60] sm:$0xff] }
  0x2e   :  { %vm294_vm9 = vcmp.gt.s32.totalorder %v1950_v53, 0  ;;  %v53_v7 = vmul.f32 24.0, %v2144_v12  ;;  %v643_v9 = vadd.s32 31, %v615_v57  ;;  %vm902_vm10 = vcmp.lt.s32.totalorder %v871_v58, 365  ;;  %1847 = vmatprep.subr.mxu1 %v1303_v63  ;;  %1768 = vmatpush3.msra.mxu0 %v1255_v1  ;;  %v1283_v54 = vld [vmem:[%s3384_s1 + $0x118] sm:$0xff] }
  0x2f   :  { %v1952_v2 = vcvt.f32.s32 %v1951_v59  ;;  %v295_v14 = vsel %vm294_vm9, %v1950_v53, 0  ;;  %v1983_v15 = vtrunc.f32 %v548_v62  ;;  %v352_v19 = vadd.s32 24, %v321_v61  ;;  %1848 = vmatpush3.msra.mxu1 %v1287_v10  ;;  %1769 = vmatprep.subr.mxu0 %v1270_v8  ;;  %v1298_v61 = vld [vmem:[%s3384_s1 + $0x190] sm:$0xff]  ;;  %v1265_v10 = vld [vmem:[%s3384_s1 + $0x88] sm:$0xff] }
  0x30   :  { %2051 = vset.pattern.permute.xlu1 %v2094_v0  ;;  %v323_v20 = vsel %vm322_vm8, %v291_v49, 6  ;;  %v2324_v21 = vadd.f32 0.5, %v17_v60  ;;  %v1921_v24 = vtrunc.f32 %v53_v7  ;;  %v261_v5 = vmul.f32 7.0, %v2144_v12  ;;  %1849 = vmatprep.subr.mxu1 %v1302_v6  ;;  %v1250_v62 = vld [vmem:[%s3384_s1 + $0x10] sm:$0xff] }
  0x31   :  { %154 = vperm.xlu1 %2051, %v119_v56   ;;  %690 = vperm.xlu0 %2065, %v651_v52   ;;  %vm296_vm11 = vcmp.gt.s32.totalorder %v1952_v2, 0  ;;  %v1984_v23 = vcvt.f32.s32 %v1983_v15  ;;  %v903_v26 = vsel %vm902_vm10, %v871_v58, 365  ;;  %vm326_vm12 = vcmp.lt.s32.totalorder %v295_v14, 6  ;;  %v1266_v58 = vld [vmem:[%s3384_s1 + $0x90] sm:$0xff]  ;;  %v1249_v15 = vld [vmem:[%s3384_s1 + $0x8] sm:$0xff] }
  0x32   :  { %v297_v22 = vsel %vm296_vm11, %v1952_v2, 0  ;;  %1770 = vmatpush3.msra.mxu0 %v1254_v18  ;;  %v353_v30 = vadd.s32 24, %v323_v20  ;;  %v837_v31 = vmul.f32 366.0, %v2144_v12  ;;  %v262_v32 = vmul.f32 7.0, %v2324_v21  ;;  %1850 = vmatpush3.msra.mxu1 %v1286_v27  ;;  %v20_v12 = vld [vmem:[%s3383_s0 + $0x48] sm:$0xff]  ;;  %v1282_v7 = vld [vmem:[%s3384_s1 + $0x110] sm:$0xff] }
  0x33   :  { %vm584_vm13 = vcmp.gt.s32.totalorder %v1984_v23, 0  ;;  %vm328_vm14 = vcmp.lt.s32.totalorder %v297_v22, 6  ;;  %v931_v35 = vadd.s32 63, %v903_v26  ;;  %v327_v36 = vsel %vm326_vm12, %v295_v14, 6  ;;  %1771 = vmatprep.subr.mxu0 %v1269_v28  ;;  %1851 = vmatprep.subr.mxu1 %v1301_v29  ;;  %v1297_v14 = vld [vmem:[%s3384_s1 + $0x188] sm:$0xff]  ;;  %v1264_v27 = vld [vmem:[%s3384_s1 + $0x80] sm:$0xff] }
  0x34   :  { %v1922_v37 = vcvt.f32.s32 %v1921_v24  ;;  %v1953_v38 = vtrunc.f32 %v261_v5  ;;  %v585_v13 = vsel %vm584_vm13, %v1984_v23, 0  ;;  %1772 = vmatpush3.msra.mxu0 %v1253_v4  ;;  %v329_v40 = vsel %vm328_vm14, %v297_v22, 6  ;;  %1852 = vmatpush3.msra.mxu1 %v1285_v33  ;;  %v1281_v5 = vld [vmem:[%s3384_s1 + $0x108] sm:$0xff]  ;;  %v1296_v28 = vld [vmem:[%s3384_s1 + $0x180] sm:$0xff] }
  0x35   :  { %2052 = vset.pattern.permute.xlu1 %v2095_v16  ;;  %2076 = vset.pattern.permute.xlu0 %v2097_v25  ;;  %v355_v43 = vadd.s32 24, %v327_v36  ;;  %v2017_v44 = vtrunc.f32 %v837_v31  ;;  %v1955_v45 = vtrunc.f32 %v262_v32  ;;  %vm616_vm15 = vcmp.lt.s32.totalorder %v585_v13, 31  ;;  %v1280_v31 = vld [vmem:[%s3384_s1 + $0x100] sm:$0xff] }
  0x36   :  { %666 = vperm.xlu1 %2052, %v643_v9   ;;  %369 = vperm.xlu0 %2076, %v352_v19   ;;  %vm90_vm0 = vcmp.gt.s32.totalorder %v1922_v37, 0  ;;  %v1954_v49 = vcvt.f32.s32 %v1953_v38  ;;  %v2375_v50 = vadd.f32 0.5, %v20_v12  ;;  %v356_v52 = vadd.s32 24, %v329_v40 }
  0x37   :  { %1773 = vmatprep.subr.mxu0 %v1268_v34  ;;  %1853 = vmatprep.subr.mxu1 %v1300_v39  ;;  %v1956_v53 = vcvt.f32.s32 %v1955_v45  ;;  %v2384_v57 = vadd.f32 0.5, %v23_v46  ;;  %v617_v59 = vsel %vm616_vm15, %v585_v13, 31  ;;  %v91_v60 = vsel %vm90_vm0, %v1922_v37, 0 }
  0x38   :  { %1774 = vmatpush3.msra.mxu0 %v1252_v41  ;;  %1854 = vmatpush3.msra.mxu1 %v1284_v42  ;;  %v265_v56 = vmul.f32 7.0, %v2375_v50  ;;  %vm298_vm2 = vcmp.gt.s32.totalorder %v1954_v49, 0  ;;  %v2018_v63 = vcvt.f32.s32 %v2017_v44  ;;  %v54_v8 = vmul.f32 24.0, %v2324_v21 }
  0x39   :  { %1775 = vmatprep.subr.mxu0 %v1267_v47  ;;  %1855 = vmatprep.subr.mxu1 %v1299_v48  ;;  %vm300_vm1 = vcmp.gt.s32.totalorder %v1956_v53, 0  ;;  %v268_v9 = vmul.f32 7.0, %v2384_v57  ;;  %v644_v6 = vadd.s32 31, %v617_v59  ;;  %vm122_vm4 = vcmp.lt.s32.totalorder %v91_v60, 23  ;;  %v21_v59 = vld [vmem:[%s3383_s0 + $0x50] sm:$0xff] }
  0x3a   :  { %2053 = vset.pattern.permute.xlu1 %v2096_v17  ;;  %372 = vperm.xlu0 %2076, %v353_v30   ;;  %v301_v1 = vsel %vm300_vm1, %v1956_v53, 0  ;;  %v1961_v2 = vtrunc.f32 %v265_v56  ;;  %v299_v20 = vsel %vm298_vm2, %v1954_v49, 0  ;;  %v550_v23 = vmul.f32 32.0, %v2324_v21  ;;  %v1248_v30 = vld [vmem:[%s3384_s1] sm:$0xff] }
  0x3b   :  { %954 = vperm.xlu1 %2053, %v931_v35   ;;  %1776 = vmatpush3.msra.mxu0 %v1251_v51  ;;  %vm332_vm3 = vcmp.lt.s32.totalorder %v301_v1, 6  ;;  %v1967_v24 = vtrunc.f32 %v268_v9  ;;  %vm874_vm5 = vcmp.gt.s32.totalorder %v2018_v63, 0  ;;  %v55_v26 = vmul.f32 24.0, %v2142_v11 }
  0x3c   :  { %1856 = vmatpush3.msra.mxu1 %v1283_v54  ;;  %1777 = vmatprep.subr.mxu0 %v1266_v58  ;;  %v333_v18 = vsel %vm332_vm3, %v301_v1, 6  ;;  %v1962_v19 = vcvt.f32.s32 %v1961_v2  ;;  %v123_v32 = vsel %vm122_vm4, %v91_v60, 23  ;;  %vm330_vm7 = vcmp.lt.s32.totalorder %v299_v20, 6  ;;  %v24_v60 = vld [vmem:[%s3383_s0 + $0x68] sm:$0xff] }
  0x3d   :  { %1857 = vmatprep.subr.mxu1 %v1298_v61  ;;  %1778 = vmatpush3.msra.mxu0 %v1250_v62  ;;  %v358_v22 = vadd.s32 24, %v333_v18  ;;  %v1968_v4 = vcvt.f32.s32 %v1967_v24  ;;  %v1923_v33 = vtrunc.f32 %v54_v8  ;;  %v875_v34 = vsel %vm874_vm5, %v2018_v63, 0 }
  0x3e   :  { %378 = vperm.xlu0 %2076, %v355_v43   ;;  %1858 = vmatpush3.msra.mxu1 %v1282_v7  ;;  %vm306_vm6 = vcmp.gt.s32.totalorder %v1962_v19, 0  ;;  %v1987_v35 = vtrunc.f32 %v550_v23  ;;  %v838_v38 = vmul.f32 366.0, %v2324_v21  ;;  %v1925_v12 = vtrunc.f32 %v55_v26 }
  0x3f   :  { %2055 = vset.pattern.permute.xlu1 %v2097_v25  ;;  %1779 = vmatprep.subr.mxu0 %v1265_v10  ;;  %v307_v29 = vsel %vm306_vm6, %v1962_v19, 0  ;;  %vm312_vm9 = vcmp.gt.s32.totalorder %v1968_v4, 0  ;;  %v331_v39 = vsel %vm330_vm7, %v299_v20, 6  ;;  %v1924_v40 = vcvt.f32.s32 %v1923_v33 }
  0x40   :  { %381 = vperm.xlu1 %2055, %v356_v52   ;;  %1859 = vmatprep.subr.mxu1 %v1297_v14  ;;  %vm338_vm8 = vcmp.lt.s32.totalorder %v307_v29, 6  ;;  %v313_v13 = vsel %vm312_vm9, %v1968_v4, 0  ;;  %v1926_v42 = vcvt.f32.s32 %v1925_v12  ;;  %vm906_vm11 = vcmp.lt.s32.totalorder %v875_v34, 365 }
  0x41   :  { %1780 = vmatpush3.msra.mxu0 %v1249_v15  ;;  %1860 = vmatpush3.msra.mxu1 %v1281_v5  ;;  %v339_v36 = vsel %vm338_vm8, %v307_v29, 6  ;;  %vm344_vm10 = vcmp.lt.s32.totalorder %v313_v13, 6  ;;  %v1988_v43 = vcvt.f32.s32 %v1987_v35  ;;  %v357_v45 = vadd.s32 24, %v331_v39 }
  0x42   :  { %387 = vperm.xlu0 %2076, %v358_v22   ;;  %1781 = vmatprep.subr.mxu0 %v1264_v27  ;;  %v361_v37 = vadd.s32 24, %v339_v36  ;;  %v345_v41 = vsel %vm344_vm10, %v313_v13, 6  ;;  %v2019_v46 = vtrunc.f32 %v838_v38  ;;  %vm94_vm12 = vcmp.gt.s32.totalorder %v1926_v42, 0 }
  0x43   :  { %1861 = vmatprep.subr.mxu1 %v1296_v28  ;;  %1782 = vmatpush3.msra.mxu0 %v1248_v30  ;;  %v364_v44 = vadd.s32 24, %v345_v41  ;;  %v263_v21 = vmul.f32 7.0, %v2142_v11  ;;  %v95_v47 = vsel %vm94_vm12, %v1926_v42, 0  ;;  %v907_v48 = vsel %vm906_vm11, %v875_v34, 365 }
  0x44   :  { %2056 = vset.pattern.permute.xlu1 %v2095_v16  ;;  %1862 = vmatpush3.msra.mxu1 %v1280_v31  ;;  %vm92_vm13 = vcmp.gt.s32.totalorder %v1924_v40, 0  ;;  %vm126_vm14 = vcmp.lt.s32.totalorder %v95_v47, 23  ;;  %vm588_vm15 = vcmp.gt.s32.totalorder %v1988_v43, 0  ;;  %v2020_v49 = vcvt.f32.s32 %v2019_v46 }
  0x45   :  { %669 = vperm.xlu1 %2056, %v644_v6   ;;  %v127_v51 = vsel %vm126_vm14, %v95_v47, 23  ;;  %v933_v52 = vadd.s32 63, %v907_v48  ;;  %v93_v53 = vsel %vm92_vm13, %v1924_v40, 0  ;;  %v1957_v54 = vtrunc.f32 %v263_v21 }
  0x46   :  { %396 = vperm.xlu0 %2076, %v361_v37   ;;  %v589_v56 = vsel %vm588_vm15, %v1988_v43, 0  ;;  %v551_v58 = vmul.f32 32.0, %v2142_v11  ;;  %vm124_vm0 = vcmp.lt.s32.totalorder %v93_v53, 23  ;;  %vm876_vm1 = vcmp.gt.s32.totalorder %v2020_v49, 0 }
  0x47   :  { %vm620_vm2 = vcmp.lt.s32.totalorder %v589_v56, 31  ;;  %v1958_v61 = vcvt.f32.s32 %v1957_v54  ;;  %v2447_v63 = vadd.f32 0.5, %v21_v59  ;;  %v2449_v11 = vadd.f32 0.5, %v24_v60  ;;  %v25_v54 = vld [vmem:[%s3383_s0 + $0x70] sm:$0xff]  ;;  %v26_v60 = vld [vmem:[%s3383_s0 + $0x78] sm:$0xff] }
  0x48   :  { %v1989_v62 = vtrunc.f32 %v551_v58  ;;  %v125_v1 = vsel %vm124_vm0, %v93_v53, 23  ;;  %v877_v2 = vsel %vm876_vm1, %v2020_v49, 0  ;;  %v621_v7 = vsel %vm620_vm2, %v589_v56, 31 }
  0x49   :  { %2057 = vset.pattern.permute.xlu1 %v2094_v0  ;;  %v58_v10 = vmul.f32 24.0, %v2447_v63  ;;  %v61_v8 = vmul.f32 24.0, %v2449_v11  ;;  %vm302_vm3 = vcmp.gt.s32.totalorder %v1958_v61, 0  ;;  %vm908_vm4 = vcmp.lt.s32.totalorder %v877_v2, 365 }
  0x4a   :  { %160 = vperm.xlu1 %2057, %v123_v32   ;;  %405 = vperm.xlu0 %2076, %v364_v44   ;;  %v1990_v9 = vcvt.f32.s32 %v1989_v62  ;;  %v646_v15 = vadd.s32 31, %v621_v7  ;;  %v56_v6 = vmul.f32 24.0, %v2167_v3  ;;  %v842_v19 = vmul.f32 366.0, %v2447_v63 }
  0x4b   :  { %v1931_v14 = vtrunc.f32 %v58_v10  ;;  %v1937_v18 = vtrunc.f32 %v61_v8  ;;  %v303_v20 = vsel %vm302_vm3, %v1958_v61, 0  ;;  %v264_v22 = vmul.f32 7.0, %v2167_v3 }
  0x4c   :  { %v909_v24 = vsel %vm908_vm4, %v877_v2, 365  ;;  %vm590_vm5 = vcmp.gt.s32.totalorder %v1990_v9, 0  ;;  %v2027_v26 = vtrunc.f32 %v842_v19  ;;  %vm334_vm7 = vcmp.lt.s32.totalorder %v303_v20, 6 }
  0x4d   :  { %v1932_v23 = vcvt.f32.s32 %v1931_v14  ;;  %v1938_v5 = vcvt.f32.s32 %v1937_v18  ;;  %v1927_v27 = vtrunc.f32 %v56_v6  ;;  %v934_v29 = vadd.s32 63, %v909_v24 }
  0x4e   :  { %2058 = vset.pattern.permute.xlu1 %v2097_v25  ;;  %2079 = vset.pattern.permute.xlu0 %v2094_v0  ;;  %v1959_v4 = vtrunc.f32 %v264_v22  ;;  %v591_v31 = vsel %vm590_vm5, %v1990_v9, 0  ;;  %v840_v32 = vmul.f32 366.0, %v2167_v3  ;;  %v335_v34 = vsel %vm334_vm7, %v303_v20, 6 }
  0x4f   :  { %384 = vperm.xlu1 %2058, %v357_v45   ;;  %166 = vperm.xlu0 %2079, %v127_v51   ;;  %vm100_vm6 = vcmp.gt.s32.totalorder %v1932_v23, 0  ;;  %vm106_vm8 = vcmp.gt.s32.totalorder %v1938_v5, 0  ;;  %v2028_v35 = vcvt.f32.s32 %v2027_v26  ;;  %v1928_v36 = vcvt.f32.s32 %v1927_v27 }
  0x50   :  { %v101_v28 = vsel %vm100_vm6, %v1932_v23, 0  ;;  %v107_v30 = vsel %vm106_vm8, %v1938_v5, 0  ;;  %vm622_vm11 = vcmp.lt.s32.totalorder %v591_v31, 31  ;;  %v1960_v38 = vcvt.f32.s32 %v1959_v4 }
  0x51   :  { %vm132_vm9 = vcmp.lt.s32.totalorder %v101_v28, 23  ;;  %vm138_vm10 = vcmp.lt.s32.totalorder %v107_v30, 23  ;;  %vm884_vm12 = vcmp.gt.s32.totalorder %v2028_v35, 0  ;;  %v359_v13 = vadd.s32 24, %v335_v34 }
  0x52   :  { %v133_v33 = vsel %vm132_vm9, %v101_v28, 23  ;;  %v139_v37 = vsel %vm138_vm10, %v107_v30, 23  ;;  %v2023_v12 = vtrunc.f32 %v840_v32  ;;  %v885_v39 = vsel %vm884_vm12, %v2028_v35, 0 }
  0x53   :  { %2059 = vset.pattern.permute.xlu1 %v2096_v17  ;;  %175 = vperm.xlu0 %2079, %v133_v33   ;;  %vm916_vm13 = vcmp.lt.s32.totalorder %v885_v39, 365  ;;  %v623_v40 = vsel %vm622_vm11, %v591_v31, 31  ;;  %vm96_vm14 = vcmp.gt.s32.totalorder %v1928_v36, 0  ;;  %vm304_vm15 = vcmp.gt.s32.totalorder %v1960_v38, 0 }
  0x54   :  { %960 = vperm.xlu1 %2059, %v933_v52   ;;  %v917_v3 = vsel %vm916_vm13, %v885_v39, 365  ;;  %v2024_v42 = vcvt.f32.s32 %v2023_v12  ;;  %v57_v43 = vmul.f32 24.0, %v2375_v50  ;;  %v647_v44 = vadd.s32 31, %v623_v40 }
  0x55   :  { %v938_v41 = vadd.s32 63, %v917_v3  ;;  %v97_v45 = vsel %vm96_vm14, %v1928_v36, 0  ;;  %v305_v46 = vsel %vm304_vm15, %v1960_v38, 0  ;;  %v553_v21 = vmul.f32 32.0, %v2375_v50 }
  0x56   :  { %vm128_vm0 = vcmp.lt.s32.totalorder %v97_v45, 23  ;;  %vm880_vm1 = vcmp.gt.s32.totalorder %v2024_v42, 0  ;;  %v1929_v47 = vtrunc.f32 %v57_v43  ;;  %vm336_vm2 = vcmp.lt.s32.totalorder %v305_v46, 6 }
  0x57   :  { %184 = vperm.xlu0 %2079, %v139_v37   ;;  %v1993_v48 = vtrunc.f32 %v553_v21  ;;  %v845_v49 = vmul.f32 366.0, %v2449_v11  ;;  %v129_v51 = vsel %vm128_vm0, %v97_v45, 23  ;;  %v881_v52 = vsel %vm880_vm1, %v2024_v42, 0 }
  0x58   :  { %2060 = vset.pattern.permute.xlu1 %v2094_v0  ;;  %v841_v53 = vmul.f32 366.0, %v2375_v50  ;;  %v337_v56 = vsel %vm336_vm2, %v305_v46, 6  ;;  %v1930_v58 = vcvt.f32.s32 %v1929_v47  ;;  %vm912_vm3 = vcmp.lt.s32.totalorder %v881_v52, 365 }
  0x59   :  { %163 = vperm.xlu1 %2060, %v125_v1   ;;  %v2033_v59 = vtrunc.f32 %v845_v49  ;;  %v1994_v61 = vcvt.f32.s32 %v1993_v48  ;;  %v2474_v62 = vadd.f32 0.5, %v25_v54  ;;  %v360_v1 = vadd.s32 24, %v337_v56 }
  0x5a   :  { %v2025_v50 = vtrunc.f32 %v841_v53  ;;  %vm98_vm4 = vcmp.gt.s32.totalorder %v1930_v58, 0  ;;  %v266_v7 = vmul.f32 7.0, %v2447_v63  ;;  %v2478_v8 = vadd.f32 0.5, %v26_v60 }
  0x5b   :  { %2082 = vset.pattern.permute.xlu0 %v2096_v17  ;;  %v2034_v2 = vcvt.f32.s32 %v2033_v59  ;;  %v558_v10 = vmul.f32 32.0, %v2474_v62  ;;  %v913_v9 = vsel %vm912_vm3, %v881_v52, 365  ;;  %vm594_vm6 = vcmp.gt.s32.totalorder %v1994_v61, 0 }
  0x5c   :  { %975 = vperm.xlu0 %2082, %v938_v41   ;;  %v2026_v6 = vcvt.f32.s32 %v2025_v50  ;;  %v936_v19 = vadd.s32 63, %v913_v9  ;;  %v1963_v20 = vtrunc.f32 %v266_v7  ;;  %v271_v23 = vmul.f32 7.0, %v2478_v8 }
  0x5d   :  { %2061 = vset.pattern.permute.xlu1 %v2095_v16  ;;  %vm890_vm5 = vcmp.gt.s32.totalorder %v2034_v2, 0  ;;  %v2003_v18 = vtrunc.f32 %v558_v10  ;;  %v595_v24 = vsel %vm594_vm6, %v1994_v61, 0  ;;  %v554_v5 = vmul.f32 32.0, %v2447_v63 }
  0x5e   :  { %675 = vperm.xlu1 %2061, %v646_v15   ;;  %v891_v14 = vsel %vm890_vm5, %v2034_v2, 0  ;;  %v99_v15 = vsel %vm98_vm4, %v1930_v58, 0  ;;  %vm882_vm9 = vcmp.gt.s32.totalorder %v2026_v6, 0  ;;  %v1973_v28 = vtrunc.f32 %v271_v23 }
  0x5f   :  { %vm922_vm7 = vcmp.lt.s32.totalorder %v891_v14, 365  ;;  %v2004_v27 = vcvt.f32.s32 %v2003_v18  ;;  %vm130_vm8 = vcmp.lt.s32.totalorder %v99_v15, 23  ;;  %vm626_vm11 = vcmp.lt.s32.totalorder %v595_v24, 31 }
  0x60   :  { %v923_v22 = vsel %vm922_vm7, %v891_v14, 365  ;;  %v1995_v30 = vtrunc.f32 %v554_v5  ;;  %v1974_v31 = vcvt.f32.s32 %v1973_v28  ;;  %v131_v32 = vsel %vm130_vm8, %v99_v15, 23 }
  0x61   :  { %v941_v26 = vadd.s32 63, %v923_v22  ;;  %vm604_vm10 = vcmp.gt.s32.totalorder %v2004_v27, 0  ;;  %v883_v33 = vsel %vm882_vm9, %v2026_v6, 0  ;;  %v627_v63 = vsel %vm626_vm11, %v595_v24, 31 }
  0x62   :  { %2062 = vset.pattern.permute.xlu1 %v2096_v17  ;;  %v605_v4 = vsel %vm604_vm10, %v2004_v27, 0  ;;  %vm318_vm13 = vcmp.gt.s32.totalorder %v1974_v31, 0  ;;  %vm914_vm15 = vcmp.lt.s32.totalorder %v883_v33, 365  ;;  %v1996_v37 = vcvt.f32.s32 %v1995_v30 }
  0x63   :  { %963 = vperm.xlu1 %2062, %v934_v29   ;;  %984 = vperm.xlu0 %2082, %v941_v26   ;;  %v1964_v29 = vcvt.f32.s32 %v1963_v20  ;;  %vm636_vm12 = vcmp.lt.s32.totalorder %v605_v4, 31  ;;  %v319_v36 = vsel %vm318_vm13, %v1974_v31, 0  ;;  %v649_v38 = vadd.s32 31, %v627_v63 }
  0x64   :  { %v637_v34 = vsel %vm636_vm12, %v605_v4, 31  ;;  %vm350_vm0 = vcmp.lt.s32.totalorder %v319_v36, 6  ;;  %v267_v40 = vmul.f32 7.0, %v2224_v55  ;;  %v915_v41 = vsel %vm914_vm15, %v883_v33, 365 }
  0x65   :  { %v654_v35 = vadd.s32 31, %v637_v34  ;;  %vm308_vm14 = vcmp.gt.s32.totalorder %v1964_v29, 0  ;;  %v351_v12 = vsel %vm350_vm0, %v319_v36, 6  ;;  %vm596_vm1 = vcmp.gt.s32.totalorder %v1996_v37, 0 }
  0x66   :  { %v309_v39 = vsel %vm308_vm14, %v1964_v29, 0  ;;  %v367_v3 = vadd.s32 24, %v351_v12  ;;  %v937_v43 = vadd.s32 63, %v915_v41  ;;  %v597_v45 = vsel %vm596_vm1, %v1996_v37, 0 }
  0x67   :  { %2063 = vset.pattern.permute.xlu1 %v2097_v25  ;;  %2087 = vset.pattern.permute.xlu0 %v2095_v16  ;;  %vm340_vm2 = vcmp.lt.s32.totalorder %v309_v39, 6  ;;  %v843_v46 = vmul.f32 366.0, %v2224_v55  ;;  %vm628_vm3 = vcmp.lt.s32.totalorder %v597_v45, 31  ;;  %v60_v61 = vmul.f32 24.0, %v2384_v57 }
  0x68   :  { %390 = vperm.xlu1 %2063, %v359_v13   ;;  %699 = vperm.xlu0 %2087, %v654_v35   ;;  %v59_v13 = vmul.f32 24.0, %v2224_v55  ;;  %v341_v21 = vsel %vm340_vm2, %v309_v39, 6  ;;  %v629_v55 = vsel %vm628_vm3, %v597_v45, 31  ;;  %v556_v50 = vmul.f32 32.0, %v2384_v57 }
  0x69   :  { %v362_v52 = vadd.s32 24, %v341_v21  ;;  %v2029_v53 = vtrunc.f32 %v843_v46  ;;  %v650_v59 = vadd.s32 31, %v629_v55  ;;  %v1935_v10 = vtrunc.f32 %v60_v61 }
  0x6a   :  { %v1933_v42 = vtrunc.f32 %v59_v13  ;;  %v1999_v9 = vtrunc.f32 %v556_v50  ;;  %v844_v14 = vmul.f32 366.0, %v2384_v57  ;;  %v269_v27 = vmul.f32 7.0, %v2449_v11 }
  0x6b   :  { %v2030_v58 = vcvt.f32.s32 %v2029_v53  ;;  %v1936_v22 = vcvt.f32.s32 %v1935_v10  ;;  %v557_v33 = vmul.f32 32.0, %v2449_v11  ;;  %v43_v63 = vlaneseq }
  0x6c   :  { %2064 = vset.pattern.permute.xlu1 %v2095_v16  ;;  %2090 = vset.pattern.permute.xlu0 %v2097_v25  ;;  %v1934_v49 = vcvt.f32.s32 %v1933_v42  ;;  %v2000_v23 = vcvt.f32.s32 %v1999_v9  ;;  %v2031_v24 = vtrunc.f32 %v844_v14  ;;  %v1969_v4 = vtrunc.f32 %v269_v27 }
  0x6d   :  { %678 = vperm.xlu1 %2064, %v647_v44   ;;  %414 = vperm.xlu0 %2090, %v367_v3   ;;  %v1965_v44 = vtrunc.f32 %v267_v40  ;;  %vm886_vm7 = vcmp.gt.s32.totalorder %v2030_v58, 0  ;;  %vm104_vm10 = vcmp.gt.s32.totalorder %v1936_v22, 0  ;;  %v2527_v12 = vand.u32 127, %v43_v63 }
  0x6e   :  { %vm102_vm4 = vcmp.gt.s32.totalorder %v1934_v49, 0  ;;  %v887_v18 = vsel %vm886_vm7, %v2030_v58, 0  ;;  %vm600_vm11 = vcmp.gt.s32.totalorder %v2000_v23, 0  ;;  %v2032_v29 = vcvt.f32.s32 %v2031_v24 }
  0x6f   :  { %v103_v60 = vsel %vm102_vm4, %v1934_v49, 0  ;;  %vm918_vm9 = vcmp.lt.s32.totalorder %v887_v18, 365  ;;  %v601_v34 = vsel %vm600_vm11, %v2000_v23, 0  ;;  %v1970_v36 = vcvt.f32.s32 %v1969_v4 }
  0x70   :  { %vm134_vm6 = vcmp.lt.s32.totalorder %v103_v60, 23  ;;  %v919_v28 = vsel %vm918_vm9, %v887_v18, 365  ;;  %vm888_vm12 = vcmp.gt.s32.totalorder %v2032_v29, 0  ;;  %vm632_vm14 = vcmp.lt.s32.totalorder %v601_v34, 31 }
  0x71   :  { %2066 = vset.pattern.permute.xlu1 %v2094_v0  ;;  %2093 = vset.pattern.permute.xlu0 %v2096_v17  ;;  %v135_v6 = vsel %vm134_vm6, %v103_v60, 23  ;;  %v939_v31 = vadd.s32 63, %v919_v28  ;;  %v889_v13 = vsel %vm888_vm12, %v2032_v29, 0  ;;  %v633_v11 = vsel %vm632_vm14, %v601_v34, 31 }
  0x72   :  { %169 = vperm.xlu1 %2066, %v129_v51   ;;  %v1966_v51 = vcvt.f32.s32 %v1965_v44  ;;  %vm314_vm15 = vcmp.gt.s32.totalorder %v1970_v36, 0  ;;  %vm920_vm0 = vcmp.lt.s32.totalorder %v889_v13, 365  ;;  %v2535_v42 = vadd.s32 128, %v2527_v12 }
  0x73   :  { %v315_v44 = vsel %vm314_vm15, %v1970_v36, 0  ;;  %v62_v45 = vmul.f32 24.0, %v2474_v62  ;;  %v2539_v46 = vadd.s32 384, %v2527_v12  ;;  %v921_v21 = vsel %vm920_vm0, %v889_v13, 365 }
  0x74   :  { %vm310_vm5 = vcmp.gt.s32.totalorder %v1966_v51, 0  ;;  %v270_v49 = vmul.f32 7.0, %v2474_v62  ;;  %v2548_v53 = vadd.s32 256, %v2527_v12  ;;  %vm346_vm4 = vcmp.lt.s32.totalorder %v315_v44, 6 }
  0x75   :  { %v940_v55 = vadd.s32 63, %v921_v21  ;;  %v1939_v58 = vtrunc.f32 %v62_v45  ;;  %v347_v9 = vsel %vm346_vm4, %v315_v44, 6  ;;  %v559_v36 = vmul.f32 32.0, %v2478_v8 }
  0x76   :  { %2067 = vset.pattern.permute.xlu1 %v2097_v25  ;;  %v1971_v61 = vtrunc.f32 %v270_v49 }
  0x77   :  { %393 = vperm.xlu1 %2067, %v360_v1   ;;  %v311_v1 = vsel %vm310_vm5, %v1966_v51, 0  ;;  %v1940_v18 = vcvt.f32.s32 %v1939_v58 }
  0x78   :  { %vm342_vm8 = vcmp.lt.s32.totalorder %v311_v1, 6 }
  0x79   :  { %v343_v20 = vsel %vm342_vm8, %v311_v1, 6 }
  0x7a   :  { %v363_v26 = vadd.s32 24, %v343_v20  ;;  %v365_v20 = vadd.s32 24, %v347_v9 }
  0x7b   :  { %2068 = vset.pattern.permute.xlu1 %v2096_v17 }
  0x7c   :  { %969 = vperm.xlu1 %2068, %v936_v19  }
  0x80   :  { %2069 = vset.pattern.permute.xlu1 %v2094_v0 }
  0x81   :  { %172 = vperm.xlu1 %2069, %v131_v32   ;;  %v105_v32 = vsel %vm104_vm10, %v1936_v22, 0 }
  0x82   :  { %vm136_vm13 = vcmp.lt.s32.totalorder %v105_v32, 23 }
  0x83   :  { %v137_v39 = vsel %vm136_vm13, %v105_v32, 23 }
  0x85   :  { %2070 = vset.pattern.permute.xlu1 %v2095_v16 }
  0x86   :  { %684 = vperm.xlu1 %2070, %v649_v38   ;;  %v2001_v38 = vtrunc.f32 %v557_v33 }
  0x88   :  { %v2002_v41 = vcvt.f32.s32 %v2001_v38 }
  0x89   :  { %v2491_v47 = vpop.permute.xlu1 %148  ;;  %v2494_v48 = vpop.permute.xlu0 %145 }
  0x8a   :  { %2071 = vset.pattern.permute.xlu1 %v2096_v17  ;;  %vm602_vm2 = vcmp.gt.s32.totalorder %v2002_v41, 0  ;;  %vm193_vm11 = vcmp.eq.s32.totalorder %v2535_v42, %v2494_v48  ;;  %vm195_vm4 = vcmp.eq.s32.totalorder %v2539_v46, %v2494_v48 }
  0x8b   :  { %972 = vperm.xlu1 %2071, %v937_v43   ;;  %v652_v43 = vadd.s32 31, %v633_v11  ;;  %v603_v60 = vsel %vm602_vm2, %v2002_v41, 0  ;;  %v847_v41 = vmul.f32 366.0, %v2478_v8 }
  0x8c   :  { %vm634_vm0 = vcmp.lt.s32.totalorder %v603_v60, 31 }
  0x8d   :  { %v2497_v54 = vpop.permute.xlu1 %151  ;;  %v2499_v56 = vpop.permute.xlu0 %157  ;;  %v635_v22 = vsel %vm634_vm0, %v603_v60, 31  ;;  %v2037_v58 = vtrunc.f32 %v847_v41 }
  0x8e   :  { %vm201_vm5 = vcmp.eq.s32.totalorder %v2535_v42, %v2497_v54  ;;  %vm203_vm7 = vcmp.eq.s32.totalorder %v2539_v46, %v2497_v54  ;;  %vm200_vm10 = vcmp.eq.s32.totalorder %v2527_v12, %v2497_v54  ;;  %vm202_vm13 = vcmp.eq.s32.totalorder %v2548_v53, %v2497_v54 }
  0x8f   :  { %2072 = vset.pattern.permute.xlu1 %v2097_v25  ;;  %v653_v28 = vadd.s32 31, %v635_v22 }
  0x90   :  { %399 = vperm.xlu1 %2072, %v362_v52  }
  0x93   :  { %v2504_v2 = vpop.permute.xlu1 %657  ;;  %v2506_v7 = vpop.permute.xlu0 %948 }
  0x94   :  { %2073 = vset.pattern.permute.xlu1 %v2095_v16 }
  0x95   :  { %687 = vperm.xlu1 %2073, %v650_v59  }
  0x97   :  { %v2510_v15 = vpop.permute.xlu0 %957 }
  0x98   :  { %v2512_v19 = vpop.permute.xlu1 %945 }
  0x99   :  { %2074 = vset.pattern.permute.xlu1 %v2094_v0 }
  0x9a   :  { %178 = vperm.xlu1 %2074, %v135_v6   ;;  %v846_v6 = vmul.f32 366.0, %v2474_v62  ;;  %v1972_v62 = vcvt.f32.s32 %v1971_v61 }
  0x9b   :  { %v2515_v5 = vpop.permute.xlu0 %966 }
  0x9c   :  { %v2035_v23 = vtrunc.f32 %v846_v6 }
  0x9d   :  { %v2518_v57 = vpop.permute.xlu1 %660 }
  0x9e   :  { %2075 = vset.pattern.permute.xlu1 %v2097_v25  ;;  %v2036_v34 = vcvt.f32.s32 %v2035_v23 }
  0x9f   :  { %402 = vperm.xlu1 %2075, %v363_v26   ;;  %v2098_v26 = vmov 1.0  }
  0xa0   :  { %v2521_v30 = vpop.permute.xlu0 %663 }
  0xa2   :  { %v376_v35 = vpop.permute.xlu1 %375 }
  0xa3   :  { %2077 = vset.pattern.permute.xlu1 %v2096_v17  ;;  %vm425_vm1 = vcmp.eq.s32.totalorder %v2535_v42, %v376_v35  ;;  %vm427_vm3 = vcmp.eq.s32.totalorder %v2539_v46, %v376_v35  ;;  %vm424_vm6 = vcmp.eq.s32.totalorder %v2527_v12, %v376_v35  ;;  %vm426_vm8 = vcmp.eq.s32.totalorder %v2548_v53, %v376_v35 }
  0xa4   :  { %978 = vperm.xlu1 %2077, %v939_v31   ;;  %v2525_v37 = vpop.permute.xlu0 %672  ;;  %vm2560_vm9 = vmor %vm201_vm5, %vm425_vm1  ;;  %v63_v35 = vmul.f32 24.0, %v2478_v8  ;;  %v3414_v8 = vmov 0 }
  0xa5   :  { %vm2570_vm12 = vmor %vm203_vm7, %vm427_vm3  ;;  %vm705_vm3 = vcmp.eq.s32.totalorder %v2535_v42, %v2504_v2  ;;  %vm993_vm7 = vcmp.eq.s32.totalorder %v2535_v42, %v2512_v19 }
  0xa6   :  { %vm2581_vm14 = vmor %vm200_vm10, %vm424_vm6 }
  0xa7   :  { %v2529_v40 = vpop.permute.xlu1 %951  ;;  %vm2590_vm1 = vmor %vm202_vm13, %vm426_vm8  ;;  %vm713_vm8 = vcmp.eq.s32.totalorder %v2535_v42, %v2521_v30 }
  0xa8   :  { %2078 = vset.pattern.permute.xlu1 %v2094_v0  ;;  %v2532_v3 = vpop.permute.xlu0 %681 }
  0xa9   :  { %181 = vperm.xlu1 %2078, %v137_v39   ;;  %v2005_v39 = vtrunc.f32 %v559_v36 }
  0xab   :  { %v2006_v21 = vcvt.f32.s32 %v2005_v39 }
  0xac   :  { %v2543_v51 = vpop.permute.xlu1 %154  ;;  %v2545_v52 = vpop.permute.xlu0 %690 }
  0xad   :  { %2080 = vset.pattern.permute.xlu1 %v2095_v16 }
  0xae   :  { %693 = vperm.xlu1 %2080, %v652_v43   ;;  %v3416_v43 = vmov 0 }
  0xb1   :  { %v2576_v50 = vpop.permute.xlu1 %666  ;;  %v370_v10 = vpop.permute.xlu0 %369 }
  0xb2   :  { %2081 = vset.pattern.permute.xlu1 %v2096_v17  ;;  %vm417_vm15 = vcmp.eq.s32.totalorder %v2535_v42, %v370_v10  ;;  %vm419_vm5 = vcmp.eq.s32.totalorder %v2539_v46, %v370_v10  ;;  %vm416_vm13 = vcmp.eq.s32.totalorder %v2527_v12, %v370_v10 }
  0xb3   :  { %981 = vperm.xlu1 %2081, %v940_v55   ;;  %vm481_vm2 = vmor %vm193_vm11, %vm417_vm15  ;;  %vm192_vm11 = vcmp.eq.s32.totalorder %v2527_v12, %v2494_v48 }
  0xb4   :  { %vm769_vm6 = vmor %vm481_vm2, %vm705_vm3  ;;  %vm707_vm2 = vcmp.eq.s32.totalorder %v2539_v46, %v2504_v2  ;;  %vm418_vm3 = vcmp.eq.s32.totalorder %v2548_v53, %v370_v10 }
  0xb5   :  { %vm1057_vm10 = vmor %vm769_vm6, %vm993_vm7  ;;  %vm995_vm6 = vcmp.eq.s32.totalorder %v2539_v46, %v2512_v19  ;;  %v2633_v29 = vpop.permute.xlu0 %372 }
  0xb6   :  { %v2606_v24 = vpop.permute.xlu1 %954  ;;  %1687 = vmatprep.mubr.msk.f32.mxu0 %vm1057_vm10, %v2098_v26  ;;  %vm483_vm15 = vmor %vm195_vm4, %vm419_vm5  ;;  %vm715_vm4 = vcmp.eq.s32.totalorder %v2539_v46, %v2521_v30  ;;  %vm712_vm5 = vcmp.eq.s32.totalorder %v2527_v12, %v2521_v30  ;;  %vm316_vm10 = vcmp.gt.s32.totalorder %v1972_v62, 0 }
  0xb7   :  { %vm771_vm0 = vmor %vm483_vm15, %vm707_vm2  ;;  %2083 = vset.pattern.permute.xlu1 %v2097_v25  ;;  %vm992_vm2 = vcmp.eq.s32.totalorder %v2527_v12, %v2512_v19  ;;  %v317_v33 = vsel %vm316_vm10, %v1972_v62, 0 }
  0xb8   :  { %vm2622_vm7 = vmor %vm2560_vm9, %vm713_vm8  ;;  %408 = vperm.xlu1 %2083, %v365_v20   ;;  %vm704_vm8 = vcmp.eq.s32.totalorder %v2527_v12, %v2504_v2 }
  0xb9   :  { %vm1059_vm15 = vmor %vm771_vm0, %vm995_vm6  ;;  %vm3396_vm0 = vcmp.gt.s32.totalorder %v1940_v18, 0  ;;  %v2771_v49 = vpop.permute.xlu0 %378 }
  0xba   :  { %1719 = vmatprep.mubr.msk.f32.mxu1 %vm1059_vm15, %v2098_v26  ;;  %vm480_vm9 = vmor %vm192_vm11, %vm416_vm13  ;;  %v109_v4 = vsel %vm3396_vm0, %v1940_v18, 0  ;;  %vm714_vm13 = vcmp.eq.s32.totalorder %v2548_v53, %v2521_v30  ;;  %vm423_vm0 = vcmp.eq.s32.totalorder %v2539_v46, %v2633_v29 }
  0xbb   :  { %vm768_vm6 = vmor %vm480_vm9, %vm704_vm8  ;;  %v2667_v63 = vpop.permute.xlu1 %381  ;;  %vm140_vm10 = vcmp.lt.s32.totalorder %v109_v4, 23  ;;  %vm994_vm8 = vcmp.eq.s32.totalorder %v2548_v53, %v2512_v19  ;;  %v1941_v19 = vtrunc.f32 %v63_v35 }
  0xbc   :  { %vm2651_vm15 = vmor %vm2570_vm12, %vm715_vm4  ;;  %vm421_vm12 = vcmp.eq.s32.totalorder %v2535_v42, %v2633_v29  ;;  %2084 = vset.pattern.permute.xlu1 %v2095_v16 }
  0xbd   :  { %vm2660_vm11 = vmor %vm2581_vm14, %vm712_vm5  ;;  %vm3401_vm14 = vcmp.eq.s32.totalorder %v2548_v53, %v2494_v48  ;;  %vm706_vm5 = vcmp.eq.s32.totalorder %v2548_v53, %v2504_v2  ;;  %696 = vperm.xlu1 %2084, %v653_v28   ;;  %v141_v2 = vsel %vm140_vm10, %v109_v4, 23  ;;  %vm199_vm10 = vcmp.eq.s32.totalorder %v2539_v46, %v2491_v47 }
  0xbe   :  { %vm1056_vm9 = vmor %vm768_vm6, %vm992_vm2  ;;  %vm348_vm6 = vcmp.lt.s32.totalorder %v317_v33, 6  ;;  %v1942_v45 = vcvt.f32.s32 %v1941_v19 }
  0xbf   :  { %1688 = vmatmul.mubr.msk.f32.vlgmr.msra.gmra.mxu0 %vm1056_vm9, %v2098_v26  ;;  %vm482_vm4 = vmor %vm3401_vm14, %vm418_vm3  ;;  %vm197_vm9 = vcmp.eq.s32.totalorder %v2535_v42, %v2491_v47  ;;  %v349_v13 = vsel %vm348_vm6, %v317_v33, 6 }
  0xc0   :  { %vm770_vm2 = vmor %vm482_vm4, %vm706_vm5  ;;  %vm997_vm4 = vcmp.eq.s32.totalorder %v2535_v42, %v2506_v7  ;;  %v2721_v38 = vpop.permute.xlu1 %669  ;;  %v366_v44 = vadd.s32 24, %v349_v13 }
  0xc1   :  { %vm2691_vm3 = vmor %vm2590_vm1, %vm714_vm13  ;;  %vm709_vm13 = vcmp.eq.s32.totalorder %v2535_v42, %v2518_v57  ;;  %2085 = vset.pattern.permute.xlu1 %v2094_v0 }
  0xc2   :  { %vm1058_vm14 = vmor %vm770_vm2, %vm994_vm8  ;;  %vm3404_vm8 = vcmp.eq.s32.totalorder %v2535_v42, %v2529_v40  ;;  %187 = vperm.xlu1 %2085, %v141_v2  }
  0xc3   :  { %1720 = vmatmul.mubr.msk.f32.vlgmr.msra.gmra.mxu1 %vm1058_vm14, %v2098_v26  ;;  %vm485_vm1 = vmor %vm197_vm9, %vm421_vm12  ;;  %vm1003_vm14 = vcmp.eq.s32.totalorder %v2539_v46, %v2529_v40  ;;  %vm1000_vm12 = vcmp.eq.s32.totalorder %v2527_v12, %v2529_v40  ;;  %vm999_vm9 = vcmp.eq.s32.totalorder %v2539_v46, %v2506_v7 }
  0xc4   :  { %vm773_vm2 = vmor %vm485_vm1, %vm709_vm13  ;;  %vm3407_vm1 = vcmp.gt.s32.totalorder %v2036_v34, 0  ;;  %vm420_vm13 = vcmp.eq.s32.totalorder %v2527_v12, %v2633_v29 }
  0xc5   :  { %vm2713_vm5 = vmor %vm2622_vm7, %vm3404_vm8  ;;  %v893_v11 = vsel %vm3407_vm1, %v2036_v34, 0  ;;  %vm711_vm8 = vcmp.eq.s32.totalorder %v2539_v46, %v2518_v57  ;;  %v2779_v55 = vpop.permute.xlu1 %160 }
  0xc6   :  { %vm1061_vm7 = vmor %vm773_vm2, %vm997_vm4  ;;  %2086 = vset.pattern.permute.xlu1 %v2097_v25  ;;  %v2038_v25 = vcvt.f32.s32 %v2037_v58 }
  0xc7   :  { %1689 = vmatprep.mubr.msk.f32.mxu0 %vm1061_vm7, %v2098_v26  ;;  %vm487_vm6 = vmor %vm199_vm10, %vm423_vm0  ;;  %vm1002_vm10 = vcmp.eq.s32.totalorder %v2548_v53, %v2529_v40  ;;  %vm996_vm7 = vcmp.eq.s32.totalorder %v2527_v12, %v2506_v7  ;;  %411 = vperm.xlu1 %2086, %v366_v44  }
  0xc8   :  { %vm775_vm4 = vmor %vm487_vm6, %vm711_vm8  ;;  %vm708_vm6 = vcmp.eq.s32.totalorder %v2527_v12, %v2518_v57 }
  0xc9   :  { %vm2747_vm2 = vmor %vm2651_vm15, %vm1003_vm14  ;;  %vm196_vm15 = vcmp.eq.s32.totalorder %v2527_v12, %v2491_v47 }
  0xca   :  { %vm2756_vm0 = vmor %vm2660_vm11, %vm1000_vm12  ;;  %vm924_vm11 = vcmp.lt.s32.totalorder %v893_v11, 365  ;;  %vm422_vm12 = vcmp.eq.s32.totalorder %v2548_v53, %v2633_v29 }
  0xcb   :  { %vm1063_vm14 = vmor %vm775_vm4, %vm999_vm9  ;;  %vm198_vm4 = vcmp.eq.s32.totalorder %v2548_v53, %v2491_v47  ;;  %v925_v60 = vsel %vm924_vm11, %v893_v11, 365  ;;  %vm205_vm11 = vcmp.eq.s32.totalorder %v2535_v42, %v2543_v51  ;;  %v2808_v47 = vpop.permute.xlu1 %384  ;;  %2088 = vset.pattern.permute.xlu1 %v2096_v17 }
  0xcc   :  { %1721 = vmatprep.mubr.msk.f32.mxu1 %vm1063_vm14, %v2098_v26  ;;  %vm484_vm1 = vmor %vm196_vm15, %vm420_vm13  ;;  %vm998_vm15 = vcmp.eq.s32.totalorder %v2548_v53, %v2506_v7  ;;  %vm110_vm14 = vcmp.gt.s32.totalorder %v1942_v45, 0  ;;  %v942_v7 = vadd.s32 63, %v925_v60 }
  0xcd   :  { %vm772_vm9 = vmor %vm484_vm1, %vm708_vm6  ;;  %vm429_vm1 = vcmp.eq.s32.totalorder %v2535_v42, %v2771_v49  ;;  %v111_v40 = vsel %vm110_vm14, %v1942_v45, 0  ;;  %vm207_vm14 = vcmp.eq.s32.totalorder %v2539_v46, %v2543_v51 }
  0xce   :  { %vm2786_vm8 = vmor %vm2691_vm3, %vm1002_vm10  ;;  %vm710_vm10 = vcmp.eq.s32.totalorder %v2548_v53, %v2518_v57  ;;  %987 = vperm.xlu1 %2088, %v942_v7  }
  0xcf   :  { %vm1060_vm13 = vmor %vm772_vm9, %vm996_vm7  ;;  %vm606_vm7 = vcmp.gt.s32.totalorder %v2006_v21, 0  ;;  %v2842_v61 = vpop.permute.xlu1 %960 }
  0xd0   :  { %1690 = vmatmul.mubr.msk.f32.gmra.mxu0 %vm1060_vm13, %v2098_v26  ;;  %vm486_vm3 = vmor %vm198_vm4, %vm422_vm12  ;;  %vm431_vm12 = vcmp.eq.s32.totalorder %v2539_v46, %v2771_v49  ;;  %v607_v57 = vsel %vm606_vm7, %v2006_v21, 0  ;;  %vm428_vm7 = vcmp.eq.s32.totalorder %v2527_v12, %v2771_v49 }
  0xd1   :  { %vm774_vm6 = vmor %vm486_vm3, %vm710_vm10  ;;  %1691 = vmatprep.mubr.msk.f32.mxu0 %vm2713_vm5, %v2098_v26  ;;  %vm717_vm5 = vcmp.eq.s32.totalorder %v2535_v42, %v2576_v50  ;;  %vm142_vm3 = vcmp.lt.s32.totalorder %v111_v40, 23  ;;  %vm894_vm10 = vcmp.gt.s32.totalorder %v2038_v25, 0 }
  0xd2   :  { %vm1062_vm9 = vmor %vm774_vm6, %vm998_vm15  ;;  %vm1005_vm15 = vcmp.eq.s32.totalorder %v2535_v42, %v2606_v24  ;;  %vm638_vm6 = vcmp.lt.s32.totalorder %v607_v57, 31  ;;  %v143_v1 = vsel %vm142_vm3, %v111_v40, 23  ;;  %v895_v10 = vsel %vm894_vm10, %v2038_v25, 0  ;;  %2089 = vset.pattern.permute.xlu1 %v2094_v0 }
  0xd3   :  { %1722 = vmatmul.mubr.msk.f32.gmra.mxu1 %vm1062_vm9, %v2098_v26  ;;  %vm493_vm4 = vmor %vm205_vm11, %vm429_vm1  ;;  %vm1007_vm9 = vcmp.eq.s32.totalorder %v2539_v46, %v2606_v24  ;;  %v639_v9 = vsel %vm638_vm6, %v607_v57, 31  ;;  %190 = vperm.xlu1 %2089, %v143_v1   ;;  %vm926_vm10 = vcmp.lt.s32.totalorder %v895_v10, 365  ;;  %vm718_vm6 = vcmp.eq.s32.totalorder %v2548_v53, %v2576_v50 }
  0xd4   :  { %1723 = vmatprep.mubr.msk.f32.mxu1 %vm2747_vm2, %v2098_v26  ;;  %1692 = vmatmul.mubr.msk.f32.gmra.mxu0 %vm2756_vm0, %v2098_v26  ;;  %vm781_vm13 = vmor %vm493_vm4, %vm717_vm5  ;;  %vm719_vm0 = vcmp.eq.s32.totalorder %v2539_v46, %v2576_v50  ;;  %vm204_vm4 = vcmp.eq.s32.totalorder %v2527_v12, %v2543_v51  ;;  %v2869_v0 = vpop.permute.xlu1 %163  ;;  %v927_v14 = vsel %vm926_vm10, %v895_v10, 365  ;;  %vm1011_vm10 = vcmp.eq.s32.totalorder %v2539_v46, %v2510_v15 }
  0xd5   :  { %vm1069_vm1 = vmor %vm781_vm13, %vm1005_vm15  ;;  %vm716_vm13 = vcmp.eq.s32.totalorder %v2527_v12, %v2576_v50  ;;  %v943_v6 = vadd.s32 63, %v927_v14 }
  0xd6   :  { %1693 = vmatprep.mubr.msk.f32.mxu0 %vm1069_vm1, %v2098_v26  ;;  %vm495_vm2 = vmor %vm207_vm14, %vm431_vm12  ;;  %vm430_vm12 = vcmp.eq.s32.totalorder %v2548_v53, %v2771_v49  ;;  %vm1004_vm14 = vcmp.eq.s32.totalorder %v2527_v12, %v2606_v24  ;;  %vm206_vm1 = vcmp.eq.s32.totalorder %v2548_v53, %v2543_v51  ;;  %v655_v51 = vadd.s32 31, %v639_v9 }
  0xd7   :  { %1724 = vmatmul.mubr.msk.f32.gmra.mxu1 %vm2786_vm8, %v2098_v26  ;;  %vm783_vm11 = vmor %vm495_vm2, %vm719_vm0  ;;  %vm209_vm2 = vcmp.eq.s32.totalorder %v2535_v42, %v2499_v56  ;;  %2091 = vset.pattern.permute.xlu1 %v2095_v16 }
  0xd8   :  { %vm1071_vm5 = vmor %vm783_vm11, %vm1007_vm9  ;;  %vm1006_vm9 = vcmp.eq.s32.totalorder %v2548_v53, %v2606_v24  ;;  %702 = vperm.xlu1 %2091, %v655_v51  }
  0xd9   :  { %1725 = vmatprep.mubr.msk.f32.mxu1 %vm1071_vm5, %v2098_v26  ;;  %vm492_vm8 = vmor %vm204_vm4, %vm428_vm7  ;;  %vm433_vm7 = vcmp.eq.s32.totalorder %v2535_v42, %v2667_v63  ;;  %vm721_vm4 = vcmp.eq.s32.totalorder %v2535_v42, %v2721_v38  ;;  %v2893_v50 = vpop.permute.xlu1 %675 }
  0xda   :  { %vm780_vm15 = vmor %vm492_vm8, %vm716_vm13  ;;  %vm1009_vm8 = vcmp.eq.s32.totalorder %v2535_v42, %v2510_v15  ;;  %vm435_vm13 = vcmp.eq.s32.totalorder %v2539_v46, %v2667_v63 }
  0xdb   :  { %vm1068_vm3 = vmor %vm780_vm15, %vm1004_vm14 }
  0xdc   :  { %1694 = vmatmul.mubr.msk.f32.gmra.mxu0 %vm1068_vm3, %v2098_v26  ;;  %vm494_vm0 = vmor %vm206_vm1, %vm430_vm12  ;;  %vm211_vm12 = vcmp.eq.s32.totalorder %v2539_v46, %v2499_v56  ;;  %vm723_vm1 = vcmp.eq.s32.totalorder %v2539_v46, %v2721_v38  ;;  %2092 = vset.pattern.permute.xlu1 %v2096_v17 }
  0xdd   :  { %vm782_vm11 = vmor %vm494_vm0, %vm718_vm6  ;;  %vm208_vm0 = vcmp.eq.s32.totalorder %v2527_v12, %v2499_v56  ;;  %990 = vperm.xlu1 %2092, %v943_v6  }
  0xde   :  { %vm1070_vm5 = vmor %vm782_vm11, %vm1006_vm9  ;;  %vm720_vm11 = vcmp.eq.s32.totalorder %v2527_v12, %v2721_v38  ;;  %v2915_v16 = vpop.permute.xlu1 %963 }
  0xdf   :  { %1726 = vmatmul.mubr.msk.f32.gmra.mxu1 %vm1070_vm5, %v2098_v26  ;;  %vm497_vm15 = vmor %vm209_vm2, %vm433_vm7  ;;  %vm432_vm2 = vcmp.eq.s32.totalorder %v2527_v12, %v2667_v63  ;;  %vm210_vm5 = vcmp.eq.s32.totalorder %v2548_v53, %v2499_v56  ;;  %v388_v56 = vpop.permute.xlu0 %387 }
  0xe0   :  { %vm785_vm14 = vmor %vm497_vm15, %vm721_vm4  ;;  %vm1008_vm4 = vcmp.eq.s32.totalorder %v2527_v12, %v2510_v15 }
  0xe1   :  { %vm1073_vm3 = vmor %vm785_vm14, %vm1009_vm8  ;;  %vm434_vm8 = vcmp.eq.s32.totalorder %v2548_v53, %v2667_v63 }
  0xe2   :  { %1695 = vmatprep.mubr.msk.f32.mxu0 %vm1073_vm3, %v2098_v26  ;;  %vm499_vm7 = vmor %vm211_vm12, %vm435_vm13  ;;  %vm722_vm13 = vcmp.eq.s32.totalorder %v2548_v53, %v2721_v38 }
  0xe3   :  { %vm787_vm6 = vmor %vm499_vm7, %vm723_vm1  ;;  %vm1010_vm1 = vcmp.eq.s32.totalorder %v2548_v53, %v2510_v15  ;;  %v2931_v17 = vpop.permute.xlu1 %390  ;;  %v2953_v54 = vpop.permute.xlu0 %396 }
  0xe4   :  { %vm1075_vm9 = vmor %vm787_vm6, %vm1011_vm10  ;;  %vm437_vm10 = vcmp.eq.s32.totalorder %v2535_v42, %v2808_v47 }
  0xe5   :  { %1727 = vmatprep.mubr.msk.f32.mxu1 %vm1075_vm9, %v2098_v26  ;;  %vm496_vm15 = vmor %vm208_vm0, %vm432_vm2  ;;  %vm725_vm0 = vcmp.eq.s32.totalorder %v2535_v42, %v2525_v37  ;;  %vm213_vm2 = vcmp.eq.s32.totalorder %v2535_v42, %v2779_v55  ;;  %vm439_vm9 = vcmp.eq.s32.totalorder %v2539_v46, %v2808_v47 }
  0xe6   :  { %vm784_vm12 = vmor %vm496_vm15, %vm720_vm11  ;;  %vm1013_vm11 = vcmp.eq.s32.totalorder %v2535_v42, %v2842_v61  ;;  %vm215_vm15 = vcmp.eq.s32.totalorder %v2539_v46, %v2779_v55 }
  0xe7   :  { %vm1072_vm14 = vmor %vm784_vm12, %vm1008_vm4  ;;  %v2975_v18 = vpop.permute.xlu0 %405 }
  0xe8   :  { %1696 = vmatmul.mubr.msk.f32.gmra.mxu0 %vm1072_vm14, %v2098_v26  ;;  %vm498_vm3 = vmor %vm210_vm5, %vm434_vm8  ;;  %vm727_vm8 = vcmp.eq.s32.totalorder %v2539_v46, %v2525_v37  ;;  %vm436_vm14 = vcmp.eq.s32.totalorder %v2527_v12, %v2808_v47  ;;  %v2948_v15 = vpop.permute.xlu1 %678 }
  0xe9   :  { %vm786_vm7 = vmor %vm498_vm3, %vm722_vm13  ;;  %vm1015_vm13 = vcmp.eq.s32.totalorder %v2539_v46, %v2842_v61 }
  0xea   :  { %vm1074_vm6 = vmor %vm786_vm7, %vm1010_vm1  ;;  %vm212_vm7 = vcmp.eq.s32.totalorder %v2527_v12, %v2779_v55 }
  0xeb   :  { %1728 = vmatmul.mubr.msk.f32.gmra.mxu1 %vm1074_vm6, %v2098_v26  ;;  %vm501_vm4 = vmor %vm213_vm2, %vm437_vm10  ;;  %vm724_vm10 = vcmp.eq.s32.totalorder %v2527_v12, %v2525_v37  ;;  %vm1012_vm2 = vcmp.eq.s32.totalorder %v2527_v12, %v2842_v61  ;;  %vm438_vm6 = vcmp.eq.s32.totalorder %v2548_v53, %v2808_v47  ;;  %v167_v20 = vpop.permute.xlu0 %166 }
  0xec   :  { %vm789_vm5 = vmor %vm501_vm4, %vm725_vm0  ;;  %vm726_vm4 = vcmp.eq.s32.totalorder %v2548_v53, %v2525_v37 }
  0xed   :  { %vm1077_vm12 = vmor %vm789_vm5, %vm1013_vm11  ;;  %vm214_vm5 = vcmp.eq.s32.totalorder %v2548_v53, %v2779_v55  ;;  %v2967_v37 = vpop.permute.xlu1 %169 }
  0xee   :  { %1697 = vmatprep.mubr.msk.f32.mxu0 %vm1077_vm12, %v2098_v26  ;;  %vm503_vm1 = vmor %vm215_vm15, %vm439_vm9  ;;  %vm1014_vm15 = vcmp.eq.s32.totalorder %v2548_v53, %v2842_v61 }
  0xef   :  { %vm791_vm3 = vmor %vm503_vm1, %vm727_vm8  ;;  %v3077_v28 = vpop.permute.xlu0 %175 }
  0xf0   :  { %vm1079_vm0 = vmor %vm791_vm3, %vm1015_vm13  ;;  %vm217_vm13 = vcmp.eq.s32.totalorder %v2535_v42, %v2869_v0  ;;  %vm729_vm3 = vcmp.eq.s32.totalorder %v2535_v42, %v2893_v50 }
  0xf1   :  { %1729 = vmatprep.mubr.msk.f32.mxu1 %vm1079_vm0, %v2098_v26  ;;  %vm500_vm11 = vmor %vm212_vm7, %vm436_vm14  ;;  %vm441_vm14 = vcmp.eq.s32.totalorder %v2535_v42, %v388_v56  ;;  %vm1017_vm7 = vcmp.eq.s32.totalorder %v2535_v42, %v2915_v16  ;;  %vm219_vm0 = vcmp.eq.s32.totalorder %v2539_v46, %v2869_v0 }
  0xf2   :  { %vm788_vm9 = vmor %vm500_vm11, %vm724_vm10  ;;  %v2985_v62 = vpop.permute.xlu1 %393 }
  0xf3   :  { %vm1076_vm8 = vmor %vm788_vm9, %vm1012_vm2  ;;  %vm443_vm2 = vcmp.eq.s32.totalorder %v2539_v46, %v388_v56  ;;  %vm731_vm9 = vcmp.eq.s32.totalorder %v2539_v46, %v2893_v50 }
  0xf4   :  { %1698 = vmatmul.mubr.msk.f32.gmra.mxu0 %vm1076_vm8, %v2098_v26  ;;  %vm502_vm12 = vmor %vm214_vm5, %vm438_vm6  ;;  %vm1019_vm5 = vcmp.eq.s32.totalorder %v2539_v46, %v2915_v16  ;;  %vm216_vm8 = vcmp.eq.s32.totalorder %v2527_v12, %v2869_v0 }
  0xf5   :  { %vm790_vm1 = vmor %vm502_vm12, %vm726_vm4 }
  0xf6   :  { %vm1078_vm10 = vmor %vm790_vm1, %vm1014_vm15  ;;  %vm440_vm15 = vcmp.eq.s32.totalorder %v2527_v12, %v388_v56 }
  0xf7   :  { %1730 = vmatmul.mubr.msk.f32.gmra.mxu1 %vm1078_vm10, %v2098_v26  ;;  %vm505_vm6 = vmor %vm217_vm13, %vm441_vm14  ;;  %vm728_vm13 = vcmp.eq.s32.totalorder %v2527_v12, %v2893_v50  ;;  %vm218_vm10 = vcmp.eq.s32.totalorder %v2548_v53, %v2869_v0  ;;  %v2999_v22 = vpop.permute.xlu1 %969 }
  0xf8   :  { %vm793_vm11 = vmor %vm505_vm6, %vm729_vm3  ;;  %vm1016_vm3 = vcmp.eq.s32.totalorder %v2527_v12, %v2915_v16 }
  0xf9   :  { %vm1081_vm4 = vmor %vm793_vm11, %vm1017_vm7  ;;  %vm442_vm7 = vcmp.eq.s32.totalorder %v2548_v53, %v388_v56 }
  0xfa   :  { %1699 = vmatprep.mubr.msk.f32.mxu0 %vm1081_vm4, %v2098_v26  ;;  %vm507_vm12 = vmor %vm219_vm0, %vm443_vm2  ;;  %vm730_vm2 = vcmp.eq.s32.totalorder %v2548_v53, %v2893_v50 }
  0xfb   :  { %vm795_vm1 = vmor %vm507_vm12, %vm731_vm9  ;;  %vm1018_vm9 = vcmp.eq.s32.totalorder %v2548_v53, %v2915_v16  ;;  %vm221_vm12 = vcmp.eq.s32.totalorder %v2535_v42, %v167_v20 }
  0xfc   :  { %vm1083_vm14 = vmor %vm795_vm1, %vm1019_vm5  ;;  %vm445_vm5 = vcmp.eq.s32.totalorder %v2535_v42, %v2931_v17  ;;  %v3015_v23 = vpop.permute.xlu1 %172 }
  0xfd   :  { %1731 = vmatprep.mubr.msk.f32.mxu1 %vm1083_vm14, %v2098_v26  ;;  %vm504_vm6 = vmor %vm216_vm8, %vm440_vm15  ;;  %vm733_vm15 = vcmp.eq.s32.totalorder %v2535_v42, %v2948_v15  ;;  %vm447_vm14 = vcmp.eq.s32.totalorder %v2539_v46, %v2931_v17 }
  0xfe   :  { %vm792_vm0 = vmor %vm504_vm6, %vm728_vm13  ;;  %vm1021_vm13 = vcmp.eq.s32.totalorder %v2535_v42, %v2515_v5  ;;  %vm735_vm6 = vcmp.eq.s32.totalorder %v2539_v46, %v2948_v15 }
  0xff   :  { %vm1080_vm11 = vmor %vm792_vm0, %vm1016_vm3  ;;  %vm223_vm3 = vcmp.eq.s32.totalorder %v2539_v46, %v167_v20 }
 0x100   :  { %1700 = vmatmul.mubr.msk.f32.gmra.mxu0 %vm1080_vm11, %v2098_v26  ;;  %vm506_vm4 = vmor %vm218_vm10, %vm442_vm7  ;;  %vm444_vm11 = vcmp.eq.s32.totalorder %v2527_v12, %v2931_v17 }
 0x101   :  { %vm794_vm8 = vmor %vm506_vm4, %vm730_vm2  ;;  %vm1023_vm2 = vcmp.eq.s32.totalorder %v2539_v46, %v2515_v5  ;;  %v3031_v24 = vpop.permute.xlu1 %684 }
 0x102   :  { %vm1082_vm1 = vmor %vm794_vm8, %vm1018_vm9  ;;  %vm220_vm9 = vcmp.eq.s32.totalorder %v2527_v12, %v167_v20 }
 0x103   :  { %1732 = vmatmul.mubr.msk.f32.gmra.mxu1 %vm1082_vm1, %v2098_v26  ;;  %vm509_vm10 = vmor %vm221_vm12, %vm445_vm5  ;;  %vm732_vm5 = vcmp.eq.s32.totalorder %v2527_v12, %v2948_v15  ;;  %vm446_vm1 = vcmp.eq.s32.totalorder %v2548_v53, %v2931_v17 }
 0x104   :  { %vm797_vm7 = vmor %vm509_vm10, %vm733_vm15  ;;  %vm1020_vm15 = vcmp.eq.s32.totalorder %v2527_v12, %v2515_v5 }
 0x105   :  { %vm1085_vm0 = vmor %vm797_vm7, %vm1021_vm13  ;;  %vm222_vm13 = vcmp.eq.s32.totalorder %v2548_v53, %v167_v20 }
 0x106   :  { %1701 = vmatprep.mubr.msk.f32.mxu0 %vm1085_vm0, %v2098_v26  ;;  %vm511_vm4 = vmor %vm223_vm3, %vm447_vm14  ;;  %vm734_vm14 = vcmp.eq.s32.totalorder %v2548_v53, %v2948_v15  ;;  %v3046_v27 = vpop.permute.xlu1 %972 }
 0x107   :  { %vm799_vm8 = vmor %vm511_vm4, %vm735_vm6  ;;  %vm1022_vm6 = vcmp.eq.s32.totalorder %v2548_v53, %v2515_v5 }
 0x108   :  { %vm1087_vm12 = vmor %vm799_vm8, %vm1023_vm2  ;;  %vm449_vm2 = vcmp.eq.s32.totalorder %v2535_v42, %v2985_v62 }
 0x109   :  { %1733 = vmatprep.mubr.msk.f32.mxu1 %vm1087_vm12, %v2098_v26  ;;  %vm508_vm10 = vmor %vm220_vm9, %vm444_vm11  ;;  %vm737_vm11 = vcmp.eq.s32.totalorder %v2535_v42, %v2532_v3  ;;  %vm225_vm9 = vcmp.eq.s32.totalorder %v2535_v42, %v2967_v37  ;;  %vm451_vm12 = vcmp.eq.s32.totalorder %v2539_v46, %v2985_v62 }
 0x10a   :  { %vm796_vm7 = vmor %vm508_vm10, %vm732_vm5  ;;  %vm1025_vm5 = vcmp.eq.s32.totalorder %v2535_v42, %v2999_v22  ;;  %vm227_vm10 = vcmp.eq.s32.totalorder %v2539_v46, %v2967_v37 }
 0x10b   :  { %vm1084_vm3 = vmor %vm796_vm7, %vm1020_vm15  ;;  %v3062_v5 = vpop.permute.xlu1 %399 }
 0x10c   :  { %1702 = vmatmul.mubr.msk.f32.gmra.mxu0 %vm1084_vm3, %v2098_v26  ;;  %vm510_vm0 = vmor %vm222_vm13, %vm446_vm1  ;;  %vm739_vm13 = vcmp.eq.s32.totalorder %v2539_v46, %v2532_v3  ;;  %vm448_vm3 = vcmp.eq.s32.totalorder %v2527_v12, %v2985_v62 }
 0x10d   :  { %vm798_vm4 = vmor %vm510_vm0, %vm734_vm14  ;;  %vm1027_vm14 = vcmp.eq.s32.totalorder %v2539_v46, %v2999_v22 }
 0x10e   :  { %vm1086_vm8 = vmor %vm798_vm4, %vm1022_vm6  ;;  %vm224_vm4 = vcmp.eq.s32.totalorder %v2527_v12, %v2967_v37 }
 0x10f   :  { %1734 = vmatmul.mubr.msk.f32.gmra.mxu1 %vm1086_vm8, %v2098_v26  ;;  %vm513_vm15 = vmor %vm225_vm9, %vm449_vm2  ;;  %vm736_vm2 = vcmp.eq.s32.totalorder %v2527_v12, %v2532_v3  ;;  %vm1024_vm9 = vcmp.eq.s32.totalorder %v2527_v12, %v2999_v22  ;;  %vm450_vm8 = vcmp.eq.s32.totalorder %v2548_v53, %v2985_v62 }
 0x110   :  { %vm801_vm1 = vmor %vm513_vm15, %vm737_vm11  ;;  %vm738_vm15 = vcmp.eq.s32.totalorder %v2548_v53, %v2532_v3  ;;  %v3084_v29 = vpop.permute.xlu1 %687  ;;  %v3099_v3 = vpop.permute.xlu0 %184 }
 0x111   :  { %vm1089_vm7 = vmor %vm801_vm1, %vm1025_vm5  ;;  %vm226_vm1 = vcmp.eq.s32.totalorder %v2548_v53, %v2967_v37 }
 0x112   :  { %1703 = vmatprep.mubr.msk.f32.mxu0 %vm1089_vm7, %v2098_v26  ;;  %vm515_vm6 = vmor %vm227_vm10, %vm451_vm12  ;;  %vm1026_vm10 = vcmp.eq.s32.totalorder %v2548_v53, %v2999_v22  ;;  %vm453_vm7 = vcmp.eq.s32.totalorder %v2535_v42, %v2953_v54 }
 0x113   :  { %vm803_vm0 = vmor %vm515_vm6, %vm739_vm13 }
 0x114   :  { %vm1091_vm11 = vmor %vm803_vm0, %vm1027_vm14  ;;  %vm741_vm0 = vcmp.eq.s32.totalorder %v2535_v42, %v3031_v24  ;;  %v976_v32 = vpop.permute.xlu0 %975 }
 0x115   :  { %1735 = vmatprep.mubr.msk.f32.mxu1 %vm1091_vm11, %v2098_v26  ;;  %vm512_vm5 = vmor %vm224_vm4, %vm448_vm3  ;;  %vm229_vm3 = vcmp.eq.s32.totalorder %v2535_v42, %v3015_v23  ;;  %vm1029_vm4 = vcmp.eq.s32.totalorder %v2535_v42, %v3046_v27  ;;  %vm455_vm11 = vcmp.eq.s32.totalorder %v2539_v46, %v2953_v54  ;;  %v3101_v4 = vpop.permute.xlu1 %178 }
 0x116   :  { %vm800_vm12 = vmor %vm512_vm5, %vm736_vm2 }
 0x117   :  { %vm1088_vm13 = vmor %vm800_vm12, %vm1024_vm9  ;;  %vm231_vm9 = vcmp.eq.s32.totalorder %v2539_v46, %v3015_v23  ;;  %vm743_vm12 = vcmp.eq.s32.totalorder %v2539_v46, %v3031_v24 }
 0x118   :  { %1704 = vmatmul.mubr.msk.f32.gmra.mxu0 %vm1088_vm13, %v2098_v26  ;;  %vm514_vm14 = vmor %vm226_vm1, %vm450_vm8  ;;  %vm1031_vm1 = vcmp.eq.s32.totalorder %v2539_v46, %v3046_v27  ;;  %vm452_vm13 = vcmp.eq.s32.totalorder %v2527_v12, %v2953_v54  ;;  %v985_v2 = vpop.permute.xlu0 %984 }
 0x119   :  { %vm802_vm6 = vmor %vm514_vm14, %vm738_vm15 }
 0x11a   :  { %vm1090_vm2 = vmor %vm802_vm6, %vm1026_vm10  ;;  %vm228_vm10 = vcmp.eq.s32.totalorder %v2527_v12, %v3015_v23  ;;  %v3119_v31 = vpop.permute.xlu1 %402 }
 0x11b   :  { %1736 = vmatmul.mubr.msk.f32.gmra.mxu1 %vm1090_vm2, %v2098_v26  ;;  %vm517_vm8 = vmor %vm229_vm3, %vm453_vm7  ;;  %vm740_vm3 = vcmp.eq.s32.totalorder %v2527_v12, %v3031_v24  ;;  %vm454_vm2 = vcmp.eq.s32.totalorder %v2548_v53, %v2953_v54 }
 0x11c   :  { %vm805_vm5 = vmor %vm517_vm8, %vm741_vm0  ;;  %vm1028_vm0 = vcmp.eq.s32.totalorder %v2527_v12, %v3046_v27  ;;  %v700_v38 = vpop.permute.xlu0 %699 }
 0x11d   :  { %vm1093_vm15 = vmor %vm805_vm5, %vm1029_vm4  ;;  %vm230_vm4 = vcmp.eq.s32.totalorder %v2548_v53, %v3015_v23 }
 0x11e   :  { %1705 = vmatprep.mubr.msk.f32.mxu0 %vm1093_vm15, %v2098_v26  ;;  %vm519_vm7 = vmor %vm231_vm9, %vm455_vm11  ;;  %vm742_vm11 = vcmp.eq.s32.totalorder %v2548_v53, %v3031_v24  ;;  %vm233_vm15 = vcmp.eq.s32.totalorder %v2535_v42, %v3077_v28 }
 0x11f   :  { %vm807_vm14 = vmor %vm519_vm7, %vm743_vm12  ;;  %vm1030_vm12 = vcmp.eq.s32.totalorder %v2548_v53, %v3046_v27  ;;  %vm745_vm7 = vcmp.eq.s32.totalorder %v2535_v42, %v3084_v29  ;;  %v3136_v33 = vpop.permute.xlu1 %978 }
 0x120   :  { %vm1095_vm6 = vmor %vm807_vm14, %vm1031_vm1  ;;  %v415_v11 = vpop.permute.xlu0 %414 }
 0x121   :  { %1737 = vmatprep.mubr.msk.f32.mxu1 %vm1095_vm6, %v2098_v26  ;;  %vm516_vm8 = vmor %vm228_vm10, %vm452_vm13  ;;  %vm457_vm13 = vcmp.eq.s32.totalorder %v2535_v42, %v3062_v5  ;;  %vm235_vm6 = vcmp.eq.s32.totalorder %v2539_v46, %v3077_v28 }
 0x122   :  { %vm804_vm5 = vmor %vm516_vm8, %vm740_vm3  ;;  %vm1033_vm3 = vcmp.eq.s32.totalorder %v2535_v42, %v976_v32 }
 0x123   :  { %vm1092_vm9 = vmor %vm804_vm5, %vm1028_vm0  ;;  %vm459_vm0 = vcmp.eq.s32.totalorder %v2539_v46, %v3062_v5 }
 0x124   :  { %1706 = vmatmul.mubr.msk.f32.gmra.mxu0 %vm1092_vm9, %v2098_v26  ;;  %vm518_vm1 = vmor %vm230_vm4, %vm454_vm2  ;;  %vm747_vm4 = vcmp.eq.s32.totalorder %v2539_v46, %v3084_v29  ;;  %vm232_vm9 = vcmp.eq.s32.totalorder %v2527_v12, %v3077_v28  ;;  %v3149_v34 = vpop.permute.xlu1 %181 }
 0x125   :  { %vm806_vm10 = vmor %vm518_vm1, %vm742_vm11  ;;  %vm1035_vm11 = vcmp.eq.s32.totalorder %v2539_v46, %v976_v32 }
 0x126   :  { %vm1094_vm14 = vmor %vm806_vm10, %vm1030_vm12  ;;  %vm456_vm12 = vcmp.eq.s32.totalorder %v2527_v12, %v3062_v5 }
 0x127   :  { %1738 = vmatmul.mubr.msk.f32.gmra.mxu1 %vm1094_vm14, %v2098_v26  ;;  %vm521_vm8 = vmor %vm233_vm15, %vm457_vm13  ;;  %vm744_vm15 = vcmp.eq.s32.totalorder %v2527_v12, %v3084_v29  ;;  %vm234_vm14 = vcmp.eq.s32.totalorder %v2548_v53, %v3077_v28 }
 0x128   :  { %vm809_vm2 = vmor %vm521_vm8, %vm745_vm7  ;;  %vm1032_vm7 = vcmp.eq.s32.totalorder %v2527_v12, %v976_v32 }
 0x129   :  { %vm1097_vm5 = vmor %vm809_vm2, %vm1033_vm3  ;;  %vm458_vm3 = vcmp.eq.s32.totalorder %v2548_v53, %v3062_v5  ;;  %v3162_v63 = vpop.permute.xlu1 %693 }
 0x12a   :  { %1707 = vmatprep.mubr.msk.f32.mxu0 %vm1097_vm5, %v2098_v26  ;;  %vm523_vm1 = vmor %vm235_vm6, %vm459_vm0  ;;  %vm746_vm6 = vcmp.eq.s32.totalorder %v2548_v53, %v3084_v29 }
 0x12b   :  { %vm811_vm10 = vmor %vm523_vm1, %vm747_vm4  ;;  %vm1034_vm4 = vcmp.eq.s32.totalorder %v2548_v53, %v976_v32 }
 0x12c   :  { %vm1099_vm13 = vmor %vm811_vm10, %vm1035_vm11  ;;  %vm461_vm11 = vcmp.eq.s32.totalorder %v2535_v42, %v3119_v31  ;;  %vm237_vm10 = vcmp.eq.s32.totalorder %v2535_v42, %v3101_v4 }
 0x12d   :  { %1739 = vmatprep.mubr.msk.f32.mxu1 %vm1099_vm13, %v2098_v26  ;;  %vm520_vm8 = vmor %vm232_vm9, %vm456_vm12  ;;  %vm1037_vm12 = vcmp.eq.s32.totalorder %v2535_v42, %v3136_v33 }
 0x12e   :  { %vm808_vm2 = vmor %vm520_vm8, %vm744_vm15  ;;  %vm463_vm15 = vcmp.eq.s32.totalorder %v2539_v46, %v3119_v31  ;;  %v982_v35 = vpop.permute.xlu1 %981 }
 0x12f   :  { %vm1096_vm0 = vmor %vm808_vm2, %vm1032_vm7  ;;  %vm749_vm7 = vcmp.eq.s32.totalorder %v2535_v42, %v2545_v52  ;;  %vm1039_vm2 = vcmp.eq.s32.totalorder %v2539_v46, %v3136_v33 }
 0x130   :  { %1708 = vmatmul.mubr.msk.f32.gmra.mxu0 %vm1096_vm0, %v2098_v26  ;;  %vm522_vm5 = vmor %vm234_vm14, %vm458_vm3  ;;  %vm239_vm3 = vcmp.eq.s32.totalorder %v2539_v46, %v3101_v4 }
 0x131   :  { %vm810_vm1 = vmor %vm522_vm5, %vm746_vm6  ;;  %vm460_vm6 = vcmp.eq.s32.totalorder %v2527_v12, %v3119_v31 }
 0x132   :  { %vm1098_vm9 = vmor %vm810_vm1, %vm1034_vm4  ;;  %vm751_vm4 = vcmp.eq.s32.totalorder %v2539_v46, %v2545_v52 }
 0x133   :  { %1740 = vmatmul.mubr.msk.f32.gmra.mxu1 %vm1098_vm9, %v2098_v26  ;;  %vm525_vm13 = vmor %vm237_vm10, %vm461_vm11  ;;  %vm236_vm11 = vcmp.eq.s32.totalorder %v2527_v12, %v3101_v4  ;;  %vm1036_vm10 = vcmp.eq.s32.totalorder %v2527_v12, %v3136_v33  ;;  %vm462_vm9 = vcmp.eq.s32.totalorder %v2548_v53, %v3119_v31  ;;  %v3195_v36 = vpop.permute.xlu1 %408 }
 0x134   :  { %vm813_vm14 = vmor %vm525_vm13, %vm749_vm7  ;;  %vm238_vm7 = vcmp.eq.s32.totalorder %v2548_v53, %v3101_v4 }
 0x135   :  { %vm1101_vm8 = vmor %vm813_vm14, %vm1037_vm12 }
 0x136   :  { %1709 = vmatprep.mubr.msk.f32.mxu0 %vm1101_vm8, %v2098_v26  ;;  %vm527_vm0 = vmor %vm239_vm3, %vm463_vm15  ;;  %vm748_vm15 = vcmp.eq.s32.totalorder %v2527_v12, %v2545_v52  ;;  %vm1038_vm3 = vcmp.eq.s32.totalorder %v2548_v53, %v3136_v33 }
 0x137   :  { %vm815_vm5 = vmor %vm527_vm0, %vm751_vm4  ;;  %vm753_vm4 = vcmp.eq.s32.totalorder %v2535_v42, %v3162_v63 }
 0x138   :  { %vm1103_vm1 = vmor %vm815_vm5, %vm1039_vm2  ;;  %vm750_vm2 = vcmp.eq.s32.totalorder %v2548_v53, %v2545_v52  ;;  %vm465_vm5 = vcmp.eq.s32.totalorder %v2535_v42, %v2975_v18  ;;  %v697_v52 = vpop.permute.xlu1 %696 }
 0x139   :  { %1741 = vmatprep.mubr.msk.f32.mxu1 %vm1103_vm1, %v2098_v26  ;;  %vm524_vm12 = vmor %vm236_vm11, %vm460_vm6  ;;  %vm241_vm6 = vcmp.eq.s32.totalorder %v2535_v42, %v3149_v34  ;;  %vm1041_vm1 = vcmp.eq.s32.totalorder %v2535_v42, %v982_v35 }
 0x13a   :  { %vm812_vm13 = vmor %vm524_vm12, %vm748_vm15  ;;  %vm755_vm15 = vcmp.eq.s32.totalorder %v2539_v46, %v3162_v63 }
 0x13b   :  { %vm1100_vm14 = vmor %vm812_vm13, %vm1036_vm10  ;;  %vm243_vm10 = vcmp.eq.s32.totalorder %v2539_v46, %v3149_v34  ;;  %vm467_vm13 = vcmp.eq.s32.totalorder %v2539_v46, %v2975_v18 }
 0x13c   :  { %1710 = vmatmul.mubr.msk.f32.gmra.mxu0 %vm1100_vm14, %v2098_v26  ;;  %vm526_vm8 = vmor %vm238_vm7, %vm462_vm9  ;;  %vm1043_vm14 = vcmp.eq.s32.totalorder %v2539_v46, %v982_v35 }
 0x13d   :  { %vm814_vm0 = vmor %vm526_vm8, %vm750_vm2  ;;  %v3228_v48 = vpop.permute.xlu1 %187 }
 0x13e   :  { %vm1102_vm11 = vmor %vm814_vm0, %vm1038_vm3  ;;  %vm240_vm3 = vcmp.eq.s32.totalorder %v2527_v12, %v3149_v34  ;;  %vm464_vm0 = vcmp.eq.s32.totalorder %v2527_v12, %v2975_v18 }
 0x13f   :  { %1742 = vmatmul.mubr.msk.f32.gmra.mxu1 %vm1102_vm11, %v2098_v26  ;;  %vm529_vm9 = vmor %vm241_vm6, %vm465_vm5  ;;  %vm752_vm6 = vcmp.eq.s32.totalorder %v2527_v12, %v3162_v63  ;;  %vm1040_vm5 = vcmp.eq.s32.totalorder %v2527_v12, %v982_v35  ;;  %vm242_vm11 = vcmp.eq.s32.totalorder %v2548_v53, %v3149_v34 }
 0x140   :  { %vm817_vm12 = vmor %vm529_vm9, %vm753_vm4 }
 0x141   :  { %vm1105_vm7 = vmor %vm817_vm12, %vm1041_vm1  ;;  %vm466_vm12 = vcmp.eq.s32.totalorder %v2548_v53, %v2975_v18 }
 0x142   :  { %1711 = vmatprep.mubr.msk.f32.mxu0 %vm1105_vm7, %v2098_v26  ;;  %vm531_vm8 = vmor %vm243_vm10, %vm467_vm13  ;;  %vm754_vm10 = vcmp.eq.s32.totalorder %v2548_v53, %v3162_v63  ;;  %vm1042_vm13 = vcmp.eq.s32.totalorder %v2548_v53, %v982_v35  ;;  %vm245_vm7 = vcmp.eq.s32.totalorder %v2535_v42, %v3099_v3  ;;  %v412_v19 = vpop.permute.xlu1 %411 }
 0x143   :  { %vm819_vm2 = vmor %vm531_vm8, %vm755_vm15 }
 0x144   :  { %vm1107_vm4 = vmor %vm819_vm2, %vm1043_vm14  ;;  %vm757_vm2 = vcmp.eq.s32.totalorder %v2535_v42, %v697_v52 }
 0x145   :  { %1743 = vmatprep.mubr.msk.f32.mxu1 %vm1107_vm4, %v2098_v26  ;;  %vm528_vm1 = vmor %vm240_vm3, %vm464_vm0  ;;  %vm469_vm3 = vcmp.eq.s32.totalorder %v2535_v42, %v3195_v36  ;;  %vm1045_vm0 = vcmp.eq.s32.totalorder %v2535_v42, %v985_v2  ;;  %vm247_vm4 = vcmp.eq.s32.totalorder %v2539_v46, %v3099_v3 }
 0x146   :  { %vm816_vm9 = vmor %vm528_vm1, %vm752_vm6 }
 0x147   :  { %vm1104_vm15 = vmor %vm816_vm9, %vm1040_vm5  ;;  %vm471_vm5 = vcmp.eq.s32.totalorder %v2539_v46, %v3195_v36  ;;  %vm759_vm9 = vcmp.eq.s32.totalorder %v2539_v46, %v697_v52 }
 0x148   :  { %1712 = vmatmul.mubr.msk.f32.gmra.mxu0 %vm1104_vm15, %v2098_v26  ;;  %vm530_vm14 = vmor %vm242_vm11, %vm466_vm12  ;;  %vm244_vm15 = vcmp.eq.s32.totalorder %v2527_v12, %v3099_v3 }
 0x149   :  { %vm818_vm8 = vmor %vm530_vm14, %vm754_vm10  ;;  %vm1047_vm10 = vcmp.eq.s32.totalorder %v2539_v46, %v985_v2  ;;  %v988_v30 = vpop.permute.xlu1 %987 }
 0x14a   :  { %vm1106_vm6 = vmor %vm818_vm8, %vm1042_vm13  ;;  %vm468_vm13 = vcmp.eq.s32.totalorder %v2527_v12, %v3195_v36 }
 0x14b   :  { %1744 = vmatmul.mubr.msk.f32.gmra.mxu1 %vm1106_vm6, %v2098_v26  ;;  %vm533_vm1 = vmor %vm245_vm7, %vm469_vm3  ;;  %vm756_vm6 = vcmp.eq.s32.totalorder %v2527_v12, %v697_v52  ;;  %vm1044_vm3 = vcmp.eq.s32.totalorder %v2527_v12, %v985_v2 }
 0x14c   :  { %vm821_vm11 = vmor %vm533_vm1, %vm757_vm2  ;;  %vm246_vm2 = vcmp.eq.s32.totalorder %v2548_v53, %v3099_v3 }
 0x14d   :  { %vm1109_vm12 = vmor %vm821_vm11, %vm1045_vm0  ;;  %vm470_vm0 = vcmp.eq.s32.totalorder %v2548_v53, %v3195_v36 }
 0x14e   :  { %1713 = vmatprep.mubr.msk.f32.mxu0 %vm1109_vm12, %v2098_v26  ;;  %vm535_vm14 = vmor %vm247_vm4, %vm471_vm5  ;;  %vm758_vm12 = vcmp.eq.s32.totalorder %v2548_v53, %v697_v52  ;;  %vm1046_vm5 = vcmp.eq.s32.totalorder %v2548_v53, %v985_v2  ;;  %v191_v13 = vpop.permute.xlu1 %190 }
 0x14f   :  { %vm823_vm8 = vmor %vm535_vm14, %vm759_vm9 }
 0x150   :  { %vm1111_vm7 = vmor %vm823_vm8, %vm1047_vm10  ;;  %vm473_vm10 = vcmp.eq.s32.totalorder %v2535_v42, %v412_v19  ;;  %vm761_vm8 = vcmp.eq.s32.totalorder %v2535_v42, %v700_v38 }
 0x151   :  { %1745 = vmatprep.mubr.msk.f32.mxu1 %vm1111_vm7, %v2098_v26  ;;  %vm532_vm1 = vmor %vm244_vm15, %vm468_vm13  ;;  %vm249_vm7 = vcmp.eq.s32.totalorder %v2535_v42, %v3228_v48  ;;  %vm1049_vm13 = vcmp.eq.s32.totalorder %v2535_v42, %v988_v30 }
 0x152   :  { %vm820_vm11 = vmor %vm532_vm1, %vm756_vm6  ;;  %vm475_vm6 = vcmp.eq.s32.totalorder %v2539_v46, %v412_v19 }
 0x153   :  { %vm1108_vm4 = vmor %vm820_vm11, %vm1044_vm3  ;;  %v703_v39 = vpop.permute.xlu1 %702 }
 0x154   :  { %1714 = vmatmul.mubr.msk.f32.gmra.mxu0 %vm1108_vm4, %v2098_v26  ;;  %vm534_vm9 = vmor %vm246_vm2, %vm470_vm0  ;;  %vm763_vm2 = vcmp.eq.s32.totalorder %v2539_v46, %v700_v38  ;;  %vm251_vm0 = vcmp.eq.s32.totalorder %v2539_v46, %v3228_v48  ;;  %vm472_vm4 = vcmp.eq.s32.totalorder %v2527_v12, %v412_v19 }
 0x155   :  { %vm822_vm14 = vmor %vm534_vm9, %vm758_vm12  ;;  %vm1051_vm12 = vcmp.eq.s32.totalorder %v2539_v46, %v988_v30 }
 0x156   :  { %vm1110_vm15 = vmor %vm822_vm14, %vm1046_vm5  ;;  %vm760_vm14 = vcmp.eq.s32.totalorder %v2527_v12, %v700_v38 }
 0x157   :  { %1746 = vmatmul.mubr.msk.f32.gmra.mxu1 %vm1110_vm15, %v2098_v26  ;;  %vm537_vm3 = vmor %vm249_vm7, %vm473_vm10  ;;  %vm248_vm10 = vcmp.eq.s32.totalorder %v2527_v12, %v3228_v48  ;;  %vm1048_vm7 = vcmp.eq.s32.totalorder %v2527_v12, %v988_v30  ;;  %vm474_vm15 = vcmp.eq.s32.totalorder %v2548_v53, %v412_v19 }
 0x158   :  { %vm825_vm1 = vmor %vm537_vm3, %vm761_vm8  ;;  %v991_v41 = vpop.permute.xlu1 %990 }
 0x159   :  { %vm1113_vm11 = vmor %vm825_vm1, %vm1049_vm13  ;;  %vm762_vm1 = vcmp.eq.s32.totalorder %v2548_v53, %v700_v38 }
 0x15a   :  { %1715 = vmatprep.mubr.msk.f32.mxu0 %vm1113_vm11, %v2098_v26  ;;  %vm539_vm5 = vmor %vm251_vm0, %vm475_vm6  ;;  %vm250_vm6 = vcmp.eq.s32.totalorder %v2548_v53, %v3228_v48  ;;  %vm1050_vm0 = vcmp.eq.s32.totalorder %v2548_v53, %v988_v30 }
 0x15b   :  { %vm827_vm9 = vmor %vm539_vm5, %vm763_vm2  ;;  %vm476_vm5 = vcmp.eq.s32.totalorder %v2527_v12, %v415_v11 }
 0x15c   :  { %vm1115_vm8 = vmor %vm827_vm9, %vm1051_vm12  ;;  %vm252_vm12 = vcmp.eq.s32.totalorder %v2527_v12, %v191_v13 }
 0x15d   :  { %1747 = vmatprep.mubr.msk.f32.mxu1 %vm1115_vm8, %v2098_v26  ;;  %vm536_vm13 = vmor %vm248_vm10, %vm472_vm4  ;;  %vm253_vm4 = vcmp.eq.s32.totalorder %v2535_v42, %v191_v13  ;;  %vm254_vm8 = vcmp.eq.s32.totalorder %v2548_v53, %v191_v13 }
 0x15e   :  { %vm824_vm3 = vmor %vm536_vm13, %vm760_vm14  ;;  %vm477_vm14 = vcmp.eq.s32.totalorder %v2535_v42, %v415_v11  ;;  %vm478_vm13 = vcmp.eq.s32.totalorder %v2548_v53, %v415_v11 }
 0x15f   :  { %vm1112_vm2 = vmor %vm824_vm3, %vm1048_vm7  ;;  %vm255_vm7 = vcmp.eq.s32.totalorder %v2539_v46, %v191_v13 }
 0x160   :  { %1716 = vmatmul.mubr.msk.f32.gmra.mxu0 %vm1112_vm2, %v2098_v26  ;;  %vm538_vm11 = vmor %vm250_vm6, %vm474_vm15  ;;  %vm479_vm15 = vcmp.eq.s32.totalorder %v2539_v46, %v415_v11  ;;  %vm765_vm6 = vcmp.eq.s32.totalorder %v2535_v42, %v703_v39 }
 0x161   :  { %vm826_vm9 = vmor %vm538_vm11, %vm762_vm1 }
 0x162   :  { %vm1114_vm10 = vmor %vm826_vm9, %vm1050_vm0  ;;  %vm1053_vm0 = vcmp.eq.s32.totalorder %v2535_v42, %v991_v41  ;;  %vm767_vm9 = vcmp.eq.s32.totalorder %v2539_v46, %v703_v39 }
 0x163   :  { %1748 = vmatmul.mubr.msk.f32.gmra.mxu1 %vm1114_vm10, %v2098_v26  ;;  %vm3295_vm3 = vmor %vm252_vm12, %vm476_vm5  ;;  %vm1055_vm10 = vcmp.eq.s32.totalorder %v2539_v46, %v991_v41 }
 0x164   :  { %v3415_v8 = vsel %vm3295_vm3, 4294967295, %v3414_v8  ;;  %vm541_vm1 = vmor %vm253_vm4, %vm477_vm14  ;;  %vm764_vm3 = vcmp.eq.s32.totalorder %v2527_v12, %v703_v39  ;;  %vm1052_vm4 = vcmp.eq.s32.totalorder %v2527_v12, %v991_v41 }
 0x165   :  { %vm3300_vm2 = vmor %vm254_vm8, %vm478_vm13  ;;  %vm766_vm13 = vcmp.eq.s32.totalorder %v2548_v53, %v703_v39 }
 0x166   :  { %v3417_v43 = vsel %vm3300_vm2, 4294967295, %v3416_v43  ;;  %vm543_vm11 = vmor %vm255_vm7, %vm479_vm15  ;;  %vm1054_vm2 = vcmp.eq.s32.totalorder %v2548_v53, %v991_v41  ;;  %vm3418_vm7 = vnez %v3415_v8 }
 0x167   :  { %vm829_vm5 = vmor %vm541_vm1, %vm765_vm6  ;;  %vm3419_vm6 = vnez %v3417_v43 }
 0x168   :  { %vm1117_vm12 = vmor %vm829_vm5, %vm1053_vm0 }
 0x169   :  { %1717 = vmatprep.mubr.msk.f32.mxu0 %vm1117_vm12, %v2098_v26  ;;  %vm831_vm14 = vmor %vm543_vm11, %vm767_vm9  ;;  %vm1602_vm11 = vcmask 261120  }
 0x16a   :  { %vm1119_vm8 = vmor %vm831_vm14, %vm1055_vm10 }
 0x16b   :  { %1749 = vmatprep.mubr.msk.f32.mxu1 %vm1119_vm8, %v2098_v26  ;;  %vm828_vm15 = vmor %vm3418_vm7, %vm764_vm3 }
 0x16c   :  { %vm1116_vm1 = vmor %vm828_vm15, %vm1052_vm4 }
 0x16d   :  { %1718 = vmatmul.mubr.msk.f32.gmra.mxu0 %vm1116_vm1, %v2098_v26  ;;  %vm830_vm0 = vmor %vm3419_vm6, %vm766_vm13 }
 0x16e   :  { %vm1118_vm5 = vmor %vm830_vm0, %vm1054_vm2 }
 0x16f   :  { %1750 = vmatmul.mubr.msk.f32.gmra.mxu1 %vm1118_vm5, %v2098_v26 }
 0x17f   :  { %v1783_v12 = vpop.f32.mrf.mxu0 }
 0x181   :  { %v1784_v42 = vpop.f32.mrf.mxu0 }
 0x182   :  { %v1785_v44 = vadd.f32 %v1784_v42, %v1783_v12 }
 0x183   :  { %v1863_v46 = vpop.f32.mrf.mxu1 }
 0x185   :  { %v1864_v45 = vpop.f32.mrf.mxu1 }
 0x186   :  { %v1865_v53 = vadd.f32 %v1864_v45, %v1863_v46 }
 0x188   :  { %v1524_v21 = vadd.f32 %v1865_v53, %v1785_v44 }
 0x18a   :  { %1603 = vst.msk [vmem:[%s3385_s2] sm:$0xff] %vm1602_vm11, %v1524_v21 }
 0x190   :  { %v1786_v49 = vpop.f32.mrf.mxu0 }
 0x192   :  { %v1787_v55 = vpop.f32.mrf.mxu0 }
 0x193   :  { %v1866_v58 = vpop.f32.mrf.mxu1  ;;  %v1788_v59 = vadd.f32 %v1787_v55, %v1786_v49 }
 0x194   :  { %v1789_v60 = vpop.f32.mrf.mxu0 }
 0x195   :  { %v1867_v25 = vpop.f32.mrf.mxu1 }
 0x196   :  { %v1868_v26 = vadd.f32 %v1867_v25, %v1866_v58  ;;  %v1790_v47 = vpop.f32.mrf.mxu0 }
 0x197   :  { %v1869_v7 = vpop.f32.mrf.mxu1  ;;  %v1791_v57 = vadd.f32 %v1790_v47, %v1789_v60 }
 0x198   :  { %v1529_v40 = vadd.f32 %v1868_v26, %v1788_v59 }
 0x199   :  { %v1870_v61 = vpop.f32.mrf.mxu1 }
 0x19a   :  { %1604 = vst.msk [vmem:[%s3385_s2 + $0x8] sm:$0xff] %vm1602_vm11, %v1529_v40  ;;  %v1871_v1 = vadd.f32 %v1870_v61, %v1869_v7 }
 0x19c   :  { %v1534_v10 = vadd.f32 %v1871_v1, %v1791_v57  ;;  %v1792_v9 = vpop.f32.mrf.mxu0 }
 0x19e   :  { %1605 = vst.msk [vmem:[%s3385_s2 + $0x10] sm:$0xff] %vm1602_vm11, %v1534_v10  ;;  %v1793_v0 = vpop.f32.mrf.mxu0 }
 0x19f   :  { %v1872_v51 = vpop.f32.mrf.mxu1  ;;  %v1794_v14 = vadd.f32 %v1793_v0, %v1792_v9 }
 0x1a1   :  { %v1873_v50 = vpop.f32.mrf.mxu1 }
 0x1a2   :  { %v1874_v6 = vadd.f32 %v1873_v50, %v1872_v51 }
 0x1a4   :  { %v1539_v16 = vadd.f32 %v1874_v6, %v1794_v14 }
 0x1a6   :  { %1606 = vst.msk [vmem:[%s3385_s2 + $0x18] sm:$0xff] %vm1602_vm11, %v1539_v16 }
 0x1a8   :  { %v1795_v17 = vpop.f32.mrf.mxu0 }
 0x1aa   :  { %v1796_v56 = vpop.f32.mrf.mxu0 }
 0x1ab   :  { %v1875_v15 = vpop.f32.mrf.mxu1  ;;  %v1797_v54 = vadd.f32 %v1796_v56, %v1795_v17 }
 0x1ad   :  { %v1876_v37 = vpop.f32.mrf.mxu1 }
 0x1ae   :  { %v1877_v18 = vadd.f32 %v1876_v37, %v1875_v15 }
 0x1b0   :  { %v1544_v62 = vadd.f32 %v1877_v18, %v1797_v54 }
 0x1b2   :  { %1607 = vst.msk [vmem:[%s3385_s2 + $0x20] sm:$0xff] %vm1602_vm11, %v1544_v62 }
 0x1b4   :  { %v1798_v20 = vpop.f32.mrf.mxu0 }
 0x1b6   :  { %v1799_v22 = vpop.f32.mrf.mxu0 }
 0x1b7   :  { %v1878_v23 = vpop.f32.mrf.mxu1  ;;  %v1800_v24 = vadd.f32 %v1799_v22, %v1798_v20 }
 0x1b9   :  { %v1879_v27 = vpop.f32.mrf.mxu1 }
 0x1ba   :  { %v1880_v5 = vadd.f32 %v1879_v27, %v1878_v23 }
 0x1bc   :  { %v1549_v28 = vadd.f32 %v1880_v5, %v1800_v24 }
 0x1be   :  { %1608 = vst.msk [vmem:[%s3385_s2 + $0x28] sm:$0xff] %vm1602_vm11, %v1549_v28 }
 0x1c0   :  { %v1801_v29 = vpop.f32.mrf.mxu0 }
 0x1c2   :  { %v1802_v3 = vpop.f32.mrf.mxu0 }
 0x1c3   :  { %v1881_v4 = vpop.f32.mrf.mxu1  ;;  %v1803_v31 = vadd.f32 %v1802_v3, %v1801_v29 }
 0x1c5   :  { %v1882_v32 = vpop.f32.mrf.mxu1 }
 0x1c6   :  { %v1883_v33 = vadd.f32 %v1882_v32, %v1881_v4 }
 0x1c8   :  { %v1554_v34 = vadd.f32 %v1883_v33, %v1803_v31 }
 0x1ca   :  { %1609 = vst.msk [vmem:[%s3385_s2 + $0x30] sm:$0xff] %vm1602_vm11, %v1554_v34 }
 0x1cc   :  { %v1804_v63 = vpop.f32.mrf.mxu0 }
 0x1ce   :  { %v1805_v35 = vpop.f32.mrf.mxu0 }
 0x1cf   :  { %v1884_v36 = vpop.f32.mrf.mxu1  ;;  %v1806_v52 = vadd.f32 %v1805_v35, %v1804_v63 }
 0x1d1   :  { %v1885_v48 = vpop.f32.mrf.mxu1 }
 0x1d2   :  { %v1886_v2 = vadd.f32 %v1885_v48, %v1884_v36 }
 0x1d4   :  { %v1559_v19 = vadd.f32 %v1886_v2, %v1806_v52 }
 0x1d6   :  { %1610 = vst.msk [vmem:[%s3385_s2 + $0x38] sm:$0xff] %vm1602_vm11, %v1559_v19 }
 0x1d8   :  { %v1807_v30 = vpop.f32.mrf.mxu0 }
 0x1da   :  { %v1808_v38 = vpop.f32.mrf.mxu0 }
 0x1db   :  { %v1887_v13 = vpop.f32.mrf.mxu1  ;;  %v1809_v39 = vadd.f32 %v1808_v38, %v1807_v30 }
 0x1dd   :  { %v1888_v11 = vpop.f32.mrf.mxu1 }
 0x1de   :  { %v1889_v41 = vadd.f32 %v1888_v11, %v1887_v13 }
 0x1e0   :  { %v1564_v8 = vadd.f32 %v1889_v41, %v1809_v39 }
 0x1e2   :  { %1611 = vst.msk [vmem:[%s3385_s2 + $0x40] sm:$0xff] %vm1602_vm11, %v1564_v8 }
 0x1e4   :  { %v1810_v43 = vpop.f32.mrf.mxu0 }
 0x1e6   :  { %v1811_v12 = vpop.f32.mrf.mxu0 }
 0x1e7   :  { %v1890_v42 = vpop.f32.mrf.mxu1  ;;  %v1812_v46 = vadd.f32 %v1811_v12, %v1810_v43 }
 0x1e9   :  { %v1891_v44 = vpop.f32.mrf.mxu1 }
 0x1ea   :  { %v1892_v45 = vadd.f32 %v1891_v44, %v1890_v42 }
 0x1ec   :  { %v1569_v53 = vadd.f32 %v1892_v45, %v1812_v46 }
 0x1ee   :  { %1612 = vst.msk [vmem:[%s3385_s2 + $0x48] sm:$0xff] %vm1602_vm11, %v1569_v53 }
 0x1f0   :  { %v1813_v21 = vpop.f32.mrf.mxu0 }
 0x1f2   :  { %v1814_v49 = vpop.f32.mrf.mxu0 }
 0x1f3   :  { %v1893_v55 = vpop.f32.mrf.mxu1  ;;  %v1815_v58 = vadd.f32 %v1814_v49, %v1813_v21 }
 0x1f5   :  { %v1894_v59 = vpop.f32.mrf.mxu1 }
 0x1f6   :  { %v1895_v60 = vadd.f32 %v1894_v59, %v1893_v55 }
 0x1f8   :  { %v1574_v25 = vadd.f32 %v1895_v60, %v1815_v58 }
 0x1fa   :  { %1613 = vst.msk [vmem:[%s3385_s2 + $0x50] sm:$0xff] %vm1602_vm11, %v1574_v25 }
 0x1fc   :  { %v1816_v26 = vpop.f32.mrf.mxu0 }
 0x1fe   :  { %v1817_v47 = vpop.f32.mrf.mxu0 }
 0x1ff   :  { %v1896_v7 = vpop.f32.mrf.mxu1  ;;  %v1818_v40 = vadd.f32 %v1817_v47, %v1816_v26 }
 0x201   :  { %v1897_v57 = vpop.f32.mrf.mxu1 }
 0x202   :  { %v1898_v61 = vadd.f32 %v1897_v57, %v1896_v7 }
 0x204   :  { %v1579_v1 = vadd.f32 %v1898_v61, %v1818_v40 }
 0x206   :  { %1614 = vst.msk [vmem:[%s3385_s2 + $0x58] sm:$0xff] %vm1602_vm11, %v1579_v1 }
 0x208   :  { %v1819_v10 = vpop.f32.mrf.mxu0 }
 0x20a   :  { %v1820_v9 = vpop.f32.mrf.mxu0 }
 0x20b   :  { %v1899_v0 = vpop.f32.mrf.mxu1  ;;  %v1821_v51 = vadd.f32 %v1820_v9, %v1819_v10 }
 0x20d   :  { %v1900_v14 = vpop.f32.mrf.mxu1 }
 0x20e   :  { %v1901_v50 = vadd.f32 %v1900_v14, %v1899_v0 }
 0x210   :  { %v1584_v6 = vadd.f32 %v1901_v50, %v1821_v51 }
 0x212   :  { %1615 = vst.msk [vmem:[%s3385_s2 + $0x60] sm:$0xff] %vm1602_vm11, %v1584_v6 }
 0x214   :  { %v1822_v16 = vpop.f32.mrf.mxu0 }
 0x216   :  { %v1823_v17 = vpop.f32.mrf.mxu0 }
 0x217   :  { %v1902_v56 = vpop.f32.mrf.mxu1  ;;  %v1824_v15 = vadd.f32 %v1823_v17, %v1822_v16 }
 0x219   :  { %v1903_v54 = vpop.f32.mrf.mxu1 }
 0x21a   :  { %v1904_v37 = vadd.f32 %v1903_v54, %v1902_v56 }
 0x21c   :  { %v1589_v18 = vadd.f32 %v1904_v37, %v1824_v15 }
 0x21e   :  { %1616 = vst.msk [vmem:[%s3385_s2 + $0x68] sm:$0xff] %vm1602_vm11, %v1589_v18 }
 0x220   :  { %v1825_v62 = vpop.f32.mrf.mxu0 }
 0x222   :  { %v1826_v20 = vpop.f32.mrf.mxu0 }
 0x223   :  { %v1905_v22 = vpop.f32.mrf.mxu1  ;;  %v1827_v23 = vadd.f32 %v1826_v20, %v1825_v62 }
 0x225   :  { %v1906_v24 = vpop.f32.mrf.mxu1 }
 0x226   :  { %v1907_v27 = vadd.f32 %v1906_v24, %v1905_v22 }
 0x228   :  { %v1594_v5 = vadd.f32 %v1907_v27, %v1827_v23 }
 0x22a   :  { %1617 = vst.msk [vmem:[%s3385_s2 + $0x70] sm:$0xff] %vm1602_vm11, %v1594_v5 }
 0x22d   :  { %v1828_v28 = vpop.f32.mrf.mxu0 }
 0x22f   :  { %v1908_v29 = vpop.f32.mrf.mxu1  ;;  %v1829_v3 = vpop.f32.mrf.mxu0 }
 0x230   :  { %v1830_v4 = vadd.f32 %v1829_v3, %v1828_v28 }
 0x231   :  { %v1909_v31 = vpop.f32.mrf.mxu1 }
 0x232   :  { %v1910_v32 = vadd.f32 %v1909_v31, %v1908_v29 }
 0x234   :  { %v1599_v33 = vadd.f32 %v1910_v32, %v1830_v4 }
 0x236   :  { %1618 = vst.msk [vmem:[%s3385_s2 + $0x78] sm:$0xff] %vm1602_vm11, %v1599_v33 }

</bundles_post_ra>
